<compile_context>
chip_gen: v5e
topology: v5e:2x2
jax: 0.10.0
libtpu: 0.0.40
codegen_flags: <defaults>
</compile_context>

<pallas_src>
import jax
import jax.numpy as jnp
import numpy as np
from jax.experimental import pallas as pl
from jax.experimental.pallas import tpu as pltpu

KH = KW = 4
PAD = 1
STRIDE = 1
LANES = 128


def _make_kernel(NB, C, H, W, Ho):
    Hp = H + 2 * PAD
    L = LANES

    def out_block_kernel(x_ref, w_ref, b_ref, o_ref, xpad_ref):
        # x_ref   : (NB, C, H, W)      VMEM  (unpadded input images)
        # w_ref   : (C*KH*KW,)         SMEM  (flattened conv weights, out_ch=1)
        # b_ref   : (1,)               SMEM  (bias)
        # o_ref   : (NB, 1, Ho, 128)   VMEM  (lane-dense output slab)
        # xpad_ref: (NB, C, Hp, 128)   VMEM  f32 scratch (zero-padded, lane-dense)

        # Build the zero-padded, lane-dense copy of the input in VMEM.
        # (Border rows and all lanes >= W stay zero; that zero region is what
        #  makes the roll wrap-around equal the conv's width padding.)
        xpad_ref[...] = jnp.zeros_like(xpad_ref)
        for n in range(NB):
            for c in range(C):
                xpad_ref[n, c, PAD:PAD + H, 0:W] = (
                    x_ref[n, c, :, :].astype(jnp.float32))

        bias = b_ref[0]  # hoisted SMEM read

        for n in range(NB):
            # KW independent partial accumulators -> ILP across the VALU slots.
            accs = [jnp.zeros((Ho, L), jnp.float32) for _ in range(KW)]
            for c in range(C):
                for kh in range(KH):
                    # One (Ho, 128) row slab per (c, kh); the KW taps are lane
                    # rotations of it (XLU) instead of KW unaligned loads.
                    slab = xpad_ref[n, c, kh:kh + Ho, :]
                    for kw in range(KW):
                        wv = w_ref[c * (KH * KW) + kh * KW + kw]
                        shift = (PAD - kw) % L  # tap[w] = slab[w + kw - PAD]
                        tap = slab if shift == 0 else pltpu.roll(slab, shift, axis=1)
                        accs[kw] = accs[kw] + tap * wv
            acc = (accs[0] + accs[1]) + (accs[2] + accs[3]) + bias
            # Lane-dense store of full 128-wide rows; wrapper slices to Wo.
            o_ref[n, 0, :, :] = jax.nn.sigmoid(acc).astype(o_ref.dtype)

    return out_block_kernel


def out_block_forward(x, weight, bias):
    """x: (N, C, H, W) f32; weight: (1, C, 4, 4); bias: (1,) -> (N, 1, H-1, W-1)."""
    N, C, H, W = x.shape
    Hp, Wp = H + 2 * PAD, W + 2 * PAD
    Ho = (Hp - KH) // STRIDE + 1
    Wo = (Wp - KW) // STRIDE + 1
    assert Wo <= LANES  # TODO(synk): for wide images (W > ~125) tile the W axis.

    # Fold the batch into at most 2 grid steps; the remaining tiny grid axis is
    # kept "parallel" purely so both v7x TensorCores get work.
    n_blocks = 2 if (N >= 2 and N % 2 == 0) else 1
    NB = N // n_blocks

    w_flat = weight.reshape(-1).astype(jnp.float32)   # (C*KH*KW,)
    b_flat = bias.reshape(-1).astype(jnp.float32)     # (1,)

    kernel = _make_kernel(NB, C, H, W, Ho)

    out_padded = pl.pallas_call(
        kernel,
        out_shape=jax.ShapeDtypeStruct((N, 1, Ho, LANES), x.dtype),
        grid=(n_blocks,),
        in_specs=[
            pl.BlockSpec((NB, C, H, W), lambda i: (i, 0, 0, 0)),
            pl.BlockSpec(memory_space=pltpu.MemorySpace.SMEM),
            pl.BlockSpec(memory_space=pltpu.MemorySpace.SMEM),
        ],
        out_specs=pl.BlockSpec((NB, 1, Ho, LANES), lambda i: (i, 0, 0, 0)),
        scratch_shapes=[pltpu.VMEM((NB, C, Hp, LANES), jnp.float32)],
        compiler_params=pltpu.CompilerParams(
            dimension_semantics=("parallel",)),
    )(x, w_flat, b_flat)

    return out_padded[:, :, :, :Wo]


def reference_forward(x, weight, bias):
    y = jax.lax.conv_general_dilated(
        x, weight,
        window_strides=(STRIDE, STRIDE),
        padding=((PAD, PAD), (PAD, PAD)),
        dimension_numbers=("NCHW", "OIHW", "NCHW"),
    )
    return jax.nn.sigmoid(y + bias.reshape(1, 1, 1, 1))


if __name__ == "__main__":
    key = jax.random.PRNGKey(0)
    k_x, k_w, k_b = jax.random.split(key, 3)

    N, C, H, W = 2, 4, 16, 16  # small shapes consistent with the module

    x = jax.random.normal(k_x, (N, C, H, W), dtype=jnp.float32)
    # Deterministic synthetic parameters (shapes from nn.Conv2d(in_ch, 1, 4)).
    fan_in = C * KH * KW
    bound = 1.0 / np.sqrt(fan_in)
    weight = jax.random.uniform(k_w, (1, C, KH, KW), dtype=jnp.float32,
                                minval=-bound, maxval=bound)
    bias = jax.random.uniform(k_b, (1,), dtype=jnp.float32,
                              minval=-bound, maxval=bound)

    out = out_block_forward(x, weight, bias)
    out = jax.block_until_ready(out)

    ref = jax.block_until_ready(reference_forward(x, weight, bias))
    assert out.shape == (N, 1, H - 1, W - 1), out.shape
    np.testing.assert_allclose(np.asarray(out), np.asarray(ref),
                               rtol=1e-5, atol=1e-5)
    print("KERNEL_OK")
</pallas_src>

<mosaic_0001>
module attributes {stable_mosaic.version = 11 : i64} {
  func.func @out_block_kernel(%arg0: i32, %arg1: memref<1x4x16x16xf32, #tpu.memory_space<vmem>>, %arg2: memref<64xf32, #tpu.memory_space<smem>>, %arg3: memref<1xf32, #tpu.memory_space<smem>>, %arg4: memref<1x1x15x128xf32, #tpu.memory_space<vmem>>, %arg5: memref<1x4x18x128xf32, #tpu.memory_space<vmem>>) attributes {dimension_semantics = [#tpu.dimension_semantics<parallel>], iteration_bounds = array<i64: 2>, scalar_prefetch = 0 : i64, scratch_operands = 1 : i64, tpu.core_type = #tpu.core_type<tc>, window_params = [{transform_indices = @transform_0, window_bounds = array<i64: 1, 4, 16, 16>}, {transform_indices = @transform_1, window_bounds = array<i64: 64>}, {transform_indices = @transform_2, window_bounds = array<i64: 1>}, {transform_indices = @transform_3, window_bounds = array<i64: 1, 1, 15, 128>}]} {
    %cst = arith.constant 0.000000e+00 : f32
    %0 = vector.broadcast %cst : f32 to vector<1x4x18x128xf32>
    %c0 = arith.constant 0 : index
    %c0_0 = arith.constant 0 : index
    %c0_1 = arith.constant 0 : index
    %c0_2 = arith.constant 0 : index
    %1 = vector.load %arg5[%c0, %c0_0, %c0_1, %c0_2] : memref<1x4x18x128xf32, #tpu.memory_space<vmem>>, vector<1x4x18x128xf32>
    tpu.vector_store %arg5[%c0, %c0_0, %c0_1, %c0_2], %0 {strides = array<i32>} : memref<1x4x18x128xf32, #tpu.memory_space<vmem>>, vector<1x4x18x128xf32>,
    %c0_3 = arith.constant 0 : index
    %c0_4 = arith.constant 0 : index
    %c0_5 = arith.constant 0 : index
    %c0_6 = arith.constant 0 : index
    %2 = vector.load %arg1[%c0_3, %c0_4, %c0_5, %c0_6] : memref<1x4x16x16xf32, #tpu.memory_space<vmem>>, vector<1x1x16x16xf32>
    %3 = vector.shape_cast %2 : vector<1x1x16x16xf32> to vector<16x16xf32>
    %c0_7 = arith.constant 0 : index
    %c0_8 = arith.constant 0 : index
    %c1 = arith.constant 1 : index
    %c0_9 = arith.constant 0 : index
    %4 = vector.load %arg5[%c0_7, %c0_8, %c1, %c0_9] : memref<1x4x18x128xf32, #tpu.memory_space<vmem>>, vector<1x1x16x16xf32>
    %5 = vector.shape_cast %4 : vector<1x1x16x16xf32> to vector<16x16xf32>
    %6 = vector.shape_cast %3 : vector<16x16xf32> to vector<1x1x16x16xf32>
    tpu.vector_store %arg5[%c0_7, %c0_8, %c1, %c0_9], %6 {strides = array<i32>} : memref<1x4x18x128xf32, #tpu.memory_space<vmem>>, vector<1x1x16x16xf32>,
    %c0_10 = arith.constant 0 : index
    %c1_11 = arith.constant 1 : index
    %c0_12 = arith.constant 0 : index
    %c0_13 = arith.constant 0 : index
    %7 = vector.load %arg1[%c0_10, %c1_11, %c0_12, %c0_13] : memref<1x4x16x16xf32, #tpu.memory_space<vmem>>, vector<1x1x16x16xf32>
    %8 = vector.shape_cast %7 : vector<1x1x16x16xf32> to vector<16x16xf32>
    %c0_14 = arith.constant 0 : index
    %c1_15 = arith.constant 1 : index
    %c1_16 = arith.constant 1 : index
    %c0_17 = arith.constant 0 : index
    %9 = vector.load %arg5[%c0_14, %c1_15, %c1_16, %c0_17] : memref<1x4x18x128xf32, #tpu.memory_space<vmem>>, vector<1x1x16x16xf32>
    %10 = vector.shape_cast %9 : vector<1x1x16x16xf32> to vector<16x16xf32>
    %11 = vector.shape_cast %8 : vector<16x16xf32> to vector<1x1x16x16xf32>
    tpu.vector_store %arg5[%c0_14, %c1_15, %c1_16, %c0_17], %11 {strides = array<i32>} : memref<1x4x18x128xf32, #tpu.memory_space<vmem>>, vector<1x1x16x16xf32>,
    %c0_18 = arith.constant 0 : index
    %c2 = arith.constant 2 : index
    %c0_19 = arith.constant 0 : index
    %c0_20 = arith.constant 0 : index
    %12 = vector.load %arg1[%c0_18, %c2, %c0_19, %c0_20] : memref<1x4x16x16xf32, #tpu.memory_space<vmem>>, vector<1x1x16x16xf32>
    %13 = vector.shape_cast %12 : vector<1x1x16x16xf32> to vector<16x16xf32>
    %c0_21 = arith.constant 0 : index
    %c2_22 = arith.constant 2 : index
    %c1_23 = arith.constant 1 : index
    %c0_24 = arith.constant 0 : index
    %14 = vector.load %arg5[%c0_21, %c2_22, %c1_23, %c0_24] : memref<1x4x18x128xf32, #tpu.memory_space<vmem>>, vector<1x1x16x16xf32>
    %15 = vector.shape_cast %14 : vector<1x1x16x16xf32> to vector<16x16xf32>
    %16 = vector.shape_cast %13 : vector<16x16xf32> to vector<1x1x16x16xf32>
    tpu.vector_store %arg5[%c0_21, %c2_22, %c1_23, %c0_24], %16 {strides = array<i32>} : memref<1x4x18x128xf32, #tpu.memory_space<vmem>>, vector<1x1x16x16xf32>,
    %c0_25 = arith.constant 0 : index
    %c3 = arith.constant 3 : index
    %c0_26 = arith.constant 0 : index
    %c0_27 = arith.constant 0 : index
    %17 = vector.load %arg1[%c0_25, %c3, %c0_26, %c0_27] : memref<1x4x16x16xf32, #tpu.memory_space<vmem>>, vector<1x1x16x16xf32>
    %18 = vector.shape_cast %17 : vector<1x1x16x16xf32> to vector<16x16xf32>
    %c0_28 = arith.constant 0 : index
    %c3_29 = arith.constant 3 : index
    %c1_30 = arith.constant 1 : index
    %c0_31 = arith.constant 0 : index
    %19 = vector.load %arg5[%c0_28, %c3_29, %c1_30, %c0_31] : memref<1x4x18x128xf32, #tpu.memory_space<vmem>>, vector<1x1x16x16xf32>
    %20 = vector.shape_cast %19 : vector<1x1x16x16xf32> to vector<16x16xf32>
    %21 = vector.shape_cast %18 : vector<16x16xf32> to vector<1x1x16x16xf32>
    tpu.vector_store %arg5[%c0_28, %c3_29, %c1_30, %c0_31], %21 {strides = array<i32>} : memref<1x4x18x128xf32, #tpu.memory_space<vmem>>, vector<1x1x16x16xf32>,
    %c0_32 = arith.constant 0 : index
    %22 = memref.load %arg3[%c0_32] : memref<1xf32, #tpu.memory_space<smem>>
    %cst_33 = arith.constant 0.000000e+00 : f32
    %23 = vector.broadcast %cst_33 : f32 to vector<15x128xf32>
    %cst_34 = arith.constant 0.000000e+00 : f32
    %24 = vector.broadcast %cst_34 : f32 to vector<15x128xf32>
    %cst_35 = arith.constant 0.000000e+00 : f32
    %25 = vector.broadcast %cst_35 : f32 to vector<15x128xf32>
    %cst_36 = arith.constant 0.000000e+00 : f32
    %26 = vector.broadcast %cst_36 : f32 to vector<15x128xf32>
    %c0_37 = arith.constant 0 : index
    %c0_38 = arith.constant 0 : index
    %c0_39 = arith.constant 0 : index
    %c0_40 = arith.constant 0 : index
    %27 = vector.load %arg5[%c0_37, %c0_38, %c0_39, %c0_40] : memref<1x4x18x128xf32, #tpu.memory_space<vmem>>, vector<1x1x15x128xf32>
    %28 = vector.shape_cast %27 : vector<1x1x15x128xf32> to vector<15x128xf32>
    %c0_41 = arith.constant 0 : index
    %29 = memref.load %arg2[%c0_41] : memref<64xf32, #tpu.memory_space<smem>>
    %c1_i32 = arith.constant 1 : i32
    %30 = tpu.dynamic_rotate %28 by %c1_i32 dim 1 : vector<15x128xf32>, i32 -> vector<15x128xf32>
    %31 = vector.broadcast %29 : f32 to vector<15x128xf32>
    %32 = arith.mulf %30, %31 : vector<15x128xf32>
    %33 = arith.addf %23, %32 : vector<15x128xf32>
    %c1_42 = arith.constant 1 : index
    %34 = memref.load %arg2[%c1_42] : memref<64xf32, #tpu.memory_space<smem>>
    %35 = vector.broadcast %34 : f32 to vector<15x128xf32>
    %36 = arith.mulf %28, %35 : vector<15x128xf32>
    %37 = arith.addf %24, %36 : vector<15x128xf32>
    %c2_43 = arith.constant 2 : index
    %38 = memref.load %arg2[%c2_43] : memref<64xf32, #tpu.memory_space<smem>>
    %c127_i32 = arith.constant 127 : i32
    %39 = tpu.dynamic_rotate %28 by %c127_i32 dim 1 : vector<15x128xf32>, i32 -> vector<15x128xf32>
    %40 = vector.broadcast %38 : f32 to vector<15x128xf32>
    %41 = arith.mulf %39, %40 : vector<15x128xf32>
    %42 = arith.addf %25, %41 : vector<15x128xf32>
    %c3_44 = arith.constant 3 : index
    %43 = memref.load %arg2[%c3_44] : memref<64xf32, #tpu.memory_space<smem>>
    %c126_i32 = arith.constant 126 : i32
    %44 = tpu.dynamic_rotate %28 by %c126_i32 dim 1 : vector<15x128xf32>, i32 -> vector<15x128xf32>
    %45 = vector.broadcast %43 : f32 to vector<15x128xf32>
    %46 = arith.mulf %44, %45 : vector<15x128xf32>
    %47 = arith.addf %26, %46 : vector<15x128xf32>
    %c0_45 = arith.constant 0 : index
    %c0_46 = arith.constant 0 : index
    %c1_47 = arith.constant 1 : index
    %c0_48 = arith.constant 0 : index
    %48 = vector.load %arg5[%c0_45, %c0_46, %c1_47, %c0_48] : memref<1x4x18x128xf32, #tpu.memory_space<vmem>>, vector<1x1x15x128xf32>
    %49 = vector.shape_cast %48 : vector<1x1x15x128xf32> to vector<15x128xf32>
    %c4 = arith.constant 4 : index
    %50 = memref.load %arg2[%c4] : memref<64xf32, #tpu.memory_space<smem>>
    %c1_i32_49 = arith.constant 1 : i32
    %51 = tpu.dynamic_rotate %49 by %c1_i32_49 dim 1 : vector<15x128xf32>, i32 -> vector<15x128xf32>
    %52 = vector.broadcast %50 : f32 to vector<15x128xf32>
    %53 = arith.mulf %51, %52 : vector<15x128xf32>
    %54 = arith.addf %33, %53 : vector<15x128xf32>
    %c5 = arith.constant 5 : index
    %55 = memref.load %arg2[%c5] : memref<64xf32, #tpu.memory_space<smem>>
    %56 = vector.broadcast %55 : f32 to vector<15x128xf32>
    %57 = arith.mulf %49, %56 : vector<15x128xf32>
    %58 = arith.addf %37, %57 : vector<15x128xf32>
    %c6 = arith.constant 6 : index
    %59 = memref.load %arg2[%c6] : memref<64xf32, #tpu.memory_space<smem>>
    %c127_i32_50 = arith.constant 127 : i32
    %60 = tpu.dynamic_rotate %49 by %c127_i32_50 dim 1 : vector<15x128xf32>, i32 -> vector<15x128xf32>
    %61 = vector.broadcast %59 : f32 to vector<15x128xf32>
    %62 = arith.mulf %60, %61 : vector<15x128xf32>
    %63 = arith.addf %42, %62 : vector<15x128xf32>
    %c7 = arith.constant 7 : index
    %64 = memref.load %arg2[%c7] : memref<64xf32, #tpu.memory_space<smem>>
    %c126_i32_51 = arith.constant 126 : i32
    %65 = tpu.dynamic_rotate %49 by %c126_i32_51 dim 1 : vector<15x128xf32>, i32 -> vector<15x128xf32>
    %66 = vector.broadcast %64 : f32 to vector<15x128xf32>
    %67 = arith.mulf %65, %66 : vector<15x128xf32>
    %68 = arith.addf %47, %67 : vector<15x128xf32>
    %c0_52 = arith.constant 0 : index
    %c0_53 = arith.constant 0 : index
    %c2_54 = arith.constant 2 : index
    %c0_55 = arith.constant 0 : index
    %69 = vector.load %arg5[%c0_52, %c0_53, %c2_54, %c0_55] : memref<1x4x18x128xf32, #tpu.memory_space<vmem>>, vector<1x1x15x128xf32>
    %70 = vector.shape_cast %69 : vector<1x1x15x128xf32> to vector<15x128xf32>
    %c8 = arith.constant 8 : index
    %71 = memref.load %arg2[%c8] : memref<64xf32, #tpu.memory_space<smem>>
    %c1_i32_56 = arith.constant 1 : i32
    %72 = tpu.dynamic_rotate %70 by %c1_i32_56 dim 1 : vector<15x128xf32>, i32 -> vector<15x128xf32>
    %73 = vector.broadcast %71 : f32 to vector<15x128xf32>
    %74 = arith.mulf %72, %73 : vector<15x128xf32>
    %75 = arith.addf %54, %74 : vector<15x128xf32>
    %c9 = arith.constant 9 : index
    %76 = memref.load %arg2[%c9] : memref<64xf32, #tpu.memory_space<smem>>
    %77 = vector.broadcast %76 : f32 to vector<15x128xf32>
    %78 = arith.mulf %70, %77 : vector<15x128xf32>
    %79 = arith.addf %58, %78 : vector<15x128xf32>
    %c10 = arith.constant 10 : index
    %80 = memref.load %arg2[%c10] : memref<64xf32, #tpu.memory_space<smem>>
    %c127_i32_57 = arith.constant 127 : i32
    %81 = tpu.dynamic_rotate %70 by %c127_i32_57 dim 1 : vector<15x128xf32>, i32 -> vector<15x128xf32>
    %82 = vector.broadcast %80 : f32 to vector<15x128xf32>
    %83 = arith.mulf %81, %82 : vector<15x128xf32>
    %84 = arith.addf %63, %83 : vector<15x128xf32>
    %c11 = arith.constant 11 : index
    %85 = memref.load %arg2[%c11] : memref<64xf32, #tpu.memory_space<smem>>
    %c126_i32_58 = arith.constant 126 : i32
    %86 = tpu.dynamic_rotate %70 by %c126_i32_58 dim 1 : vector<15x128xf32>, i32 -> vector<15x128xf32>
    %87 = vector.broadcast %85 : f32 to vector<15x128xf32>
    %88 = arith.mulf %86, %87 : vector<15x128xf32>
    %89 = arith.addf %68, %88 : vector<15x128xf32>
    %c0_59 = arith.constant 0 : index
    %c0_60 = arith.constant 0 : index
    %c3_61 = arith.constant 3 : index
    %c0_62 = arith.constant 0 : index
    %90 = vector.load %arg5[%c0_59, %c0_60, %c3_61, %c0_62] : memref<1x4x18x128xf32, #tpu.memory_space<vmem>>, vector<1x1x15x128xf32>
    %91 = vector.shape_cast %90 : vector<1x1x15x128xf32> to vector<15x128xf32>
    %c12 = arith.constant 12 : index
    %92 = memref.load %arg2[%c12] : memref<64xf32, #tpu.memory_space<smem>>
    %c1_i32_63 = arith.constant 1 : i32
    %93 = tpu.dynamic_rotate %91 by %c1_i32_63 dim 1 : vector<15x128xf32>, i32 -> vector<15x128xf32>
    %94 = vector.broadcast %92 : f32 to vector<15x128xf32>
    %95 = arith.mulf %93, %94 : vector<15x128xf32>
    %96 = arith.addf %75, %95 : vector<15x128xf32>
    %c13 = arith.constant 13 : index
    %97 = memref.load %arg2[%c13] : memref<64xf32, #tpu.memory_space<smem>>
    %98 = vector.broadcast %97 : f32 to vector<15x128xf32>
    %99 = arith.mulf %91, %98 : vector<15x128xf32>
    %100 = arith.addf %79, %99 : vector<15x128xf32>
    %c14 = arith.constant 14 : index
    %101 = memref.load %arg2[%c14] : memref<64xf32, #tpu.memory_space<smem>>
    %c127_i32_64 = arith.constant 127 : i32
    %102 = tpu.dynamic_rotate %91 by %c127_i32_64 dim 1 : vector<15x128xf32>, i32 -> vector<15x128xf32>
    %103 = vector.broadcast %101 : f32 to vector<15x128xf32>
    %104 = arith.mulf %102, %103 : vector<15x128xf32>
    %105 = arith.addf %84, %104 : vector<15x128xf32>
    %c15 = arith.constant 15 : index
    %106 = memref.load %arg2[%c15] : memref<64xf32, #tpu.memory_space<smem>>
    %c126_i32_65 = arith.constant 126 : i32
    %107 = tpu.dynamic_rotate %91 by %c126_i32_65 dim 1 : vector<15x128xf32>, i32 -> vector<15x128xf32>
    %108 = vector.broadcast %106 : f32 to vector<15x128xf32>
    %109 = arith.mulf %107, %108 : vector<15x128xf32>
    %110 = arith.addf %89, %109 : vector<15x128xf32>
    %c0_66 = arith.constant 0 : index
    %c1_67 = arith.constant 1 : index
    %c0_68 = arith.constant 0 : index
    %c0_69 = arith.constant 0 : index
    %111 = vector.load %arg5[%c0_66, %c1_67, %c0_68, %c0_69] : memref<1x4x18x128xf32, #tpu.memory_space<vmem>>, vector<1x1x15x128xf32>
    %112 = vector.shape_cast %111 : vector<1x1x15x128xf32> to vector<15x128xf32>
    %c16 = arith.constant 16 : index
    %113 = memref.load %arg2[%c16] : memref<64xf32, #tpu.memory_space<smem>>
    %c1_i32_70 = arith.constant 1 : i32
    %114 = tpu.dynamic_rotate %112 by %c1_i32_70 dim 1 : vector<15x128xf32>, i32 -> vector<15x128xf32>
    %115 = vector.broadcast %113 : f32 to vector<15x128xf32>
    %116 = arith.mulf %114, %115 : vector<15x128xf32>
    %117 = arith.addf %96, %116 : vector<15x128xf32>
    %c17 = arith.constant 17 : index
    %118 = memref.load %arg2[%c17] : memref<64xf32, #tpu.memory_space<smem>>
    %119 = vector.broadcast %118 : f32 to vector<15x128xf32>
    %120 = arith.mulf %112, %119 : vector<15x128xf32>
    %121 = arith.addf %100, %120 : vector<15x128xf32>
    %c18 = arith.constant 18 : index
    %122 = memref.load %arg2[%c18] : memref<64xf32, #tpu.memory_space<smem>>
    %c127_i32_71 = arith.constant 127 : i32
    %123 = tpu.dynamic_rotate %112 by %c127_i32_71 dim 1 : vector<15x128xf32>, i32 -> vector<15x128xf32>
    %124 = vector.broadcast %122 : f32 to vector<15x128xf32>
    %125 = arith.mulf %123, %124 : vector<15x128xf32>
    %126 = arith.addf %105, %125 : vector<15x128xf32>
    %c19 = arith.constant 19 : index
    %127 = memref.load %arg2[%c19] : memref<64xf32, #tpu.memory_space<smem>>
    %c126_i32_72 = arith.constant 126 : i32
    %128 = tpu.dynamic_rotate %112 by %c126_i32_72 dim 1 : vector<15x128xf32>, i32 -> vector<15x128xf32>
    %129 = vector.broadcast %127 : f32 to vector<15x128xf32>
    %130 = arith.mulf %128, %129 : vector<15x128xf32>
    %131 = arith.addf %110, %130 : vector<15x128xf32>
    %c0_73 = arith.constant 0 : index
    %c1_74 = arith.constant 1 : index
    %c1_75 = arith.constant 1 : index
    %c0_76 = arith.constant 0 : index
    %132 = vector.load %arg5[%c0_73, %c1_74, %c1_75, %c0_76] : memref<1x4x18x128xf32, #tpu.memory_space<vmem>>, vector<1x1x15x128xf32>
    %133 = vector.shape_cast %132 : vector<1x1x15x128xf32> to vector<15x128xf32>
    %c20 = arith.constant 20 : index
    %134 = memref.load %arg2[%c20] : memref<64xf32, #tpu.memory_space<smem>>
    %c1_i32_77 = arith.constant 1 : i32
    %135 = tpu.dynamic_rotate %133 by %c1_i32_77 dim 1 : vector<15x128xf32>, i32 -> vector<15x128xf32>
    %136 = vector.broadcast %134 : f32 to vector<15x128xf32>
    %137 = arith.mulf %135, %136 : vector<15x128xf32>
    %138 = arith.addf %117, %137 : vector<15x128xf32>
    %c21 = arith.constant 21 : index
    %139 = memref.load %arg2[%c21] : memref<64xf32, #tpu.memory_space<smem>>
    %140 = vector.broadcast %139 : f32 to vector<15x128xf32>
    %141 = arith.mulf %133, %140 : vector<15x128xf32>
    %142 = arith.addf %121, %141 : vector<15x128xf32>
    %c22 = arith.constant 22 : index
    %143 = memref.load %arg2[%c22] : memref<64xf32, #tpu.memory_space<smem>>
    %c127_i32_78 = arith.constant 127 : i32
    %144 = tpu.dynamic_rotate %133 by %c127_i32_78 dim 1 : vector<15x128xf32>, i32 -> vector<15x128xf32>
    %145 = vector.broadcast %143 : f32 to vector<15x128xf32>
    %146 = arith.mulf %144, %145 : vector<15x128xf32>
    %147 = arith.addf %126, %146 : vector<15x128xf32>
    %c23 = arith.constant 23 : index
    %148 = memref.load %arg2[%c23] : memref<64xf32, #tpu.memory_space<smem>>
    %c126_i32_79 = arith.constant 126 : i32
    %149 = tpu.dynamic_rotate %133 by %c126_i32_79 dim 1 : vector<15x128xf32>, i32 -> vector<15x128xf32>
    %150 = vector.broadcast %148 : f32 to vector<15x128xf32>
    %151 = arith.mulf %149, %150 : vector<15x128xf32>
    %152 = arith.addf %131, %151 : vector<15x128xf32>
    %c0_80 = arith.constant 0 : index
    %c1_81 = arith.constant 1 : index
    %c2_82 = arith.constant 2 : index
    %c0_83 = arith.constant 0 : index
    %153 = vector.load %arg5[%c0_80, %c1_81, %c2_82, %c0_83] : memref<1x4x18x128xf32, #tpu.memory_space<vmem>>, vector<1x1x15x128xf32>
    %154 = vector.shape_cast %153 : vector<1x1x15x128xf32> to vector<15x128xf32>
    %c24 = arith.constant 24 : index
    %155 = memref.load %arg2[%c24] : memref<64xf32, #tpu.memory_space<smem>>
    %c1_i32_84 = arith.constant 1 : i32
    %156 = tpu.dynamic_rotate %154 by %c1_i32_84 dim 1 : vector<15x128xf32>, i32 -> vector<15x128xf32>
    %157 = vector.broadcast %155 : f32 to vector<15x128xf32>
    %158 = arith.mulf %156, %157 : vector<15x128xf32>
    %159 = arith.addf %138, %158 : vector<15x128xf32>
    %c25 = arith.constant 25 : index
    %160 = memref.load %arg2[%c25] : memref<64xf32, #tpu.memory_space<smem>>
    %161 = vector.broadcast %160 : f32 to vector<15x128xf32>
    %162 = arith.mulf %154, %161 : vector<15x128xf32>
    %163 = arith.addf %142, %162 : vector<15x128xf32>
    %c26 = arith.constant 26 : index
    %164 = memref.load %arg2[%c26] : memref<64xf32, #tpu.memory_space<smem>>
    %c127_i32_85 = arith.constant 127 : i32
    %165 = tpu.dynamic_rotate %154 by %c127_i32_85 dim 1 : vector<15x128xf32>, i32 -> vector<15x128xf32>
    %166 = vector.broadcast %164 : f32 to vector<15x128xf32>
    %167 = arith.mulf %165, %166 : vector<15x128xf32>
    %168 = arith.addf %147, %167 : vector<15x128xf32>
    %c27 = arith.constant 27 : index
    %169 = memref.load %arg2[%c27] : memref<64xf32, #tpu.memory_space<smem>>
    %c126_i32_86 = arith.constant 126 : i32
    %170 = tpu.dynamic_rotate %154 by %c126_i32_86 dim 1 : vector<15x128xf32>, i32 -> vector<15x128xf32>
    %171 = vector.broadcast %169 : f32 to vector<15x128xf32>
    %172 = arith.mulf %170, %171 : vector<15x128xf32>
    %173 = arith.addf %152, %172 : vector<15x128xf32>
    %c0_87 = arith.constant 0 : index
    %c1_88 = arith.constant 1 : index
    %c3_89 = arith.constant 3 : index
    %c0_90 = arith.constant 0 : index
    %174 = vector.load %arg5[%c0_87, %c1_88, %c3_89, %c0_90] : memref<1x4x18x128xf32, #tpu.memory_space<vmem>>, vector<1x1x15x128xf32>
    %175 = vector.shape_cast %174 : vector<1x1x15x128xf32> to vector<15x128xf32>
    %c28 = arith.constant 28 : index
    %176 = memref.load %arg2[%c28] : memref<64xf32, #tpu.memory_space<smem>>
    %c1_i32_91 = arith.constant 1 : i32
    %177 = tpu.dynamic_rotate %175 by %c1_i32_91 dim 1 : vector<15x128xf32>, i32 -> vector<15x128xf32>
    %178 = vector.broadcast %176 : f32 to vector<15x128xf32>
    %179 = arith.mulf %177, %178 : vector<15x128xf32>
    %180 = arith.addf %159, %179 : vector<15x128xf32>
    %c29 = arith.constant 29 : index
    %181 = memref.load %arg2[%c29] : memref<64xf32, #tpu.memory_space<smem>>
    %182 = vector.broadcast %181 : f32 to vector<15x128xf32>
    %183 = arith.mulf %175, %182 : vector<15x128xf32>
    %184 = arith.addf %163, %183 : vector<15x128xf32>
    %c30 = arith.constant 30 : index
    %185 = memref.load %arg2[%c30] : memref<64xf32, #tpu.memory_space<smem>>
    %c127_i32_92 = arith.constant 127 : i32
    %186 = tpu.dynamic_rotate %175 by %c127_i32_92 dim 1 : vector<15x128xf32>, i32 -> vector<15x128xf32>
    %187 = vector.broadcast %185 : f32 to vector<15x128xf32>
    %188 = arith.mulf %186, %187 : vector<15x128xf32>
    %189 = arith.addf %168, %188 : vector<15x128xf32>
    %c31 = arith.constant 31 : index
    %190 = memref.load %arg2[%c31] : memref<64xf32, #tpu.memory_space<smem>>
    %c126_i32_93 = arith.constant 126 : i32
    %191 = tpu.dynamic_rotate %175 by %c126_i32_93 dim 1 : vector<15x128xf32>, i32 -> vector<15x128xf32>
    %192 = vector.broadcast %190 : f32 to vector<15x128xf32>
    %193 = arith.mulf %191, %192 : vector<15x128xf32>
    %194 = arith.addf %173, %193 : vector<15x128xf32>
    %c0_94 = arith.constant 0 : index
    %c2_95 = arith.constant 2 : index
    %c0_96 = arith.constant 0 : index
    %c0_97 = arith.constant 0 : index
    %195 = vector.load %arg5[%c0_94, %c2_95, %c0_96, %c0_97] : memref<1x4x18x128xf32, #tpu.memory_space<vmem>>, vector<1x1x15x128xf32>
    %196 = vector.shape_cast %195 : vector<1x1x15x128xf32> to vector<15x128xf32>
    %c32 = arith.constant 32 : index
    %197 = memref.load %arg2[%c32] : memref<64xf32, #tpu.memory_space<smem>>
    %c1_i32_98 = arith.constant 1 : i32
    %198 = tpu.dynamic_rotate %196 by %c1_i32_98 dim 1 : vector<15x128xf32>, i32 -> vector<15x128xf32>
    %199 = vector.broadcast %197 : f32 to vector<15x128xf32>
    %200 = arith.mulf %198, %199 : vector<15x128xf32>
    %201 = arith.addf %180, %200 : vector<15x128xf32>
    %c33 = arith.constant 33 : index
    %202 = memref.load %arg2[%c33] : memref<64xf32, #tpu.memory_space<smem>>
    %203 = vector.broadcast %202 : f32 to vector<15x128xf32>
    %204 = arith.mulf %196, %203 : vector<15x128xf32>
    %205 = arith.addf %184, %204 : vector<15x128xf32>
    %c34 = arith.constant 34 : index
    %206 = memref.load %arg2[%c34] : memref<64xf32, #tpu.memory_space<smem>>
    %c127_i32_99 = arith.constant 127 : i32
    %207 = tpu.dynamic_rotate %196 by %c127_i32_99 dim 1 : vector<15x128xf32>, i32 -> vector<15x128xf32>
    %208 = vector.broadcast %206 : f32 to vector<15x128xf32>
    %209 = arith.mulf %207, %208 : vector<15x128xf32>
    %210 = arith.addf %189, %209 : vector<15x128xf32>
    %c35 = arith.constant 35 : index
    %211 = memref.load %arg2[%c35] : memref<64xf32, #tpu.memory_space<smem>>
    %c126_i32_100 = arith.constant 126 : i32
    %212 = tpu.dynamic_rotate %196 by %c126_i32_100 dim 1 : vector<15x128xf32>, i32 -> vector<15x128xf32>
    %213 = vector.broadcast %211 : f32 to vector<15x128xf32>
    %214 = arith.mulf %212, %213 : vector<15x128xf32>
    %215 = arith.addf %194, %214 : vector<15x128xf32>
    %c0_101 = arith.constant 0 : index
    %c2_102 = arith.constant 2 : index
    %c1_103 = arith.constant 1 : index
    %c0_104 = arith.constant 0 : index
    %216 = vector.load %arg5[%c0_101, %c2_102, %c1_103, %c0_104] : memref<1x4x18x128xf32, #tpu.memory_space<vmem>>, vector<1x1x15x128xf32>
    %217 = vector.shape_cast %216 : vector<1x1x15x128xf32> to vector<15x128xf32>
    %c36 = arith.constant 36 : index
    %218 = memref.load %arg2[%c36] : memref<64xf32, #tpu.memory_space<smem>>
    %c1_i32_105 = arith.constant 1 : i32
    %219 = tpu.dynamic_rotate %217 by %c1_i32_105 dim 1 : vector<15x128xf32>, i32 -> vector<15x128xf32>
    %220 = vector.broadcast %218 : f32 to vector<15x128xf32>
    %221 = arith.mulf %219, %220 : vector<15x128xf32>
    %222 = arith.addf %201, %221 : vector<15x128xf32>
    %c37 = arith.constant 37 : index
    %223 = memref.load %arg2[%c37] : memref<64xf32, #tpu.memory_space<smem>>
    %224 = vector.broadcast %223 : f32 to vector<15x128xf32>
    %225 = arith.mulf %217, %224 : vector<15x128xf32>
    %226 = arith.addf %205, %225 : vector<15x128xf32>
    %c38 = arith.constant 38 : index
    %227 = memref.load %arg2[%c38] : memref<64xf32, #tpu.memory_space<smem>>
    %c127_i32_106 = arith.constant 127 : i32
    %228 = tpu.dynamic_rotate %217 by %c127_i32_106 dim 1 : vector<15x128xf32>, i32 -> vector<15x128xf32>
    %229 = vector.broadcast %227 : f32 to vector<15x128xf32>
    %230 = arith.mulf %228, %229 : vector<15x128xf32>
    %231 = arith.addf %210, %230 : vector<15x128xf32>
    %c39 = arith.constant 39 : index
    %232 = memref.load %arg2[%c39] : memref<64xf32, #tpu.memory_space<smem>>
    %c126_i32_107 = arith.constant 126 : i32
    %233 = tpu.dynamic_rotate %217 by %c126_i32_107 dim 1 : vector<15x128xf32>, i32 -> vector<15x128xf32>
    %234 = vector.broadcast %232 : f32 to vector<15x128xf32>
    %235 = arith.mulf %233, %234 : vector<15x128xf32>
    %236 = arith.addf %215, %235 : vector<15x128xf32>
    %c0_108 = arith.constant 0 : index
    %c2_109 = arith.constant 2 : index
    %c2_110 = arith.constant 2 : index
    %c0_111 = arith.constant 0 : index
    %237 = vector.load %arg5[%c0_108, %c2_109, %c2_110, %c0_111] : memref<1x4x18x128xf32, #tpu.memory_space<vmem>>, vector<1x1x15x128xf32>
    %238 = vector.shape_cast %237 : vector<1x1x15x128xf32> to vector<15x128xf32>
    %c40 = arith.constant 40 : index
    %239 = memref.load %arg2[%c40] : memref<64xf32, #tpu.memory_space<smem>>
    %c1_i32_112 = arith.constant 1 : i32
    %240 = tpu.dynamic_rotate %238 by %c1_i32_112 dim 1 : vector<15x128xf32>, i32 -> vector<15x128xf32>
    %241 = vector.broadcast %239 : f32 to vector<15x128xf32>
    %242 = arith.mulf %240, %241 : vector<15x128xf32>
    %243 = arith.addf %222, %242 : vector<15x128xf32>
    %c41 = arith.constant 41 : index
    %244 = memref.load %arg2[%c41] : memref<64xf32, #tpu.memory_space<smem>>
    %245 = vector.broadcast %244 : f32 to vector<15x128xf32>
    %246 = arith.mulf %238, %245 : vector<15x128xf32>
    %247 = arith.addf %226, %246 : vector<15x128xf32>
    %c42 = arith.constant 42 : index
    %248 = memref.load %arg2[%c42] : memref<64xf32, #tpu.memory_space<smem>>
    %c127_i32_113 = arith.constant 127 : i32
    %249 = tpu.dynamic_rotate %238 by %c127_i32_113 dim 1 : vector<15x128xf32>, i32 -> vector<15x128xf32>
    %250 = vector.broadcast %248 : f32 to vector<15x128xf32>
    %251 = arith.mulf %249, %250 : vector<15x128xf32>
    %252 = arith.addf %231, %251 : vector<15x128xf32>
    %c43 = arith.constant 43 : index
    %253 = memref.load %arg2[%c43] : memref<64xf32, #tpu.memory_space<smem>>
    %c126_i32_114 = arith.constant 126 : i32
    %254 = tpu.dynamic_rotate %238 by %c126_i32_114 dim 1 : vector<15x128xf32>, i32 -> vector<15x128xf32>
    %255 = vector.broadcast %253 : f32 to vector<15x128xf32>
    %256 = arith.mulf %254, %255 : vector<15x128xf32>
    %257 = arith.addf %236, %256 : vector<15x128xf32>
    %c0_115 = arith.constant 0 : index
    %c2_116 = arith.constant 2 : index
    %c3_117 = arith.constant 3 : index
    %c0_118 = arith.constant 0 : index
    %258 = vector.load %arg5[%c0_115, %c2_116, %c3_117, %c0_118] : memref<1x4x18x128xf32, #tpu.memory_space<vmem>>, vector<1x1x15x128xf32>
    %259 = vector.shape_cast %258 : vector<1x1x15x128xf32> to vector<15x128xf32>
    %c44 = arith.constant 44 : index
    %260 = memref.load %arg2[%c44] : memref<64xf32, #tpu.memory_space<smem>>
    %c1_i32_119 = arith.constant 1 : i32
    %261 = tpu.dynamic_rotate %259 by %c1_i32_119 dim 1 : vector<15x128xf32>, i32 -> vector<15x128xf32>
    %262 = vector.broadcast %260 : f32 to vector<15x128xf32>
    %263 = arith.mulf %261, %262 : vector<15x128xf32>
    %264 = arith.addf %243, %263 : vector<15x128xf32>
    %c45 = arith.constant 45 : index
    %265 = memref.load %arg2[%c45] : memref<64xf32, #tpu.memory_space<smem>>
    %266 = vector.broadcast %265 : f32 to vector<15x128xf32>
    %267 = arith.mulf %259, %266 : vector<15x128xf32>
    %268 = arith.addf %247, %267 : vector<15x128xf32>
    %c46 = arith.constant 46 : index
    %269 = memref.load %arg2[%c46] : memref<64xf32, #tpu.memory_space<smem>>
    %c127_i32_120 = arith.constant 127 : i32
    %270 = tpu.dynamic_rotate %259 by %c127_i32_120 dim 1 : vector<15x128xf32>, i32 -> vector<15x128xf32>
    %271 = vector.broadcast %269 : f32 to vector<15x128xf32>
    %272 = arith.mulf %270, %271 : vector<15x128xf32>
    %273 = arith.addf %252, %272 : vector<15x128xf32>
    %c47 = arith.constant 47 : index
    %274 = memref.load %arg2[%c47] : memref<64xf32, #tpu.memory_space<smem>>
    %c126_i32_121 = arith.constant 126 : i32
    %275 = tpu.dynamic_rotate %259 by %c126_i32_121 dim 1 : vector<15x128xf32>, i32 -> vector<15x128xf32>
    %276 = vector.broadcast %274 : f32 to vector<15x128xf32>
    %277 = arith.mulf %275, %276 : vector<15x128xf32>
    %278 = arith.addf %257, %277 : vector<15x128xf32>
    %c0_122 = arith.constant 0 : index
    %c3_123 = arith.constant 3 : index
    %c0_124 = arith.constant 0 : index
    %c0_125 = arith.constant 0 : index
    %279 = vector.load %arg5[%c0_122, %c3_123, %c0_124, %c0_125] : memref<1x4x18x128xf32, #tpu.memory_space<vmem>>, vector<1x1x15x128xf32>
    %280 = vector.shape_cast %279 : vector<1x1x15x128xf32> to vector<15x128xf32>
    %c48 = arith.constant 48 : index
    %281 = memref.load %arg2[%c48] : memref<64xf32, #tpu.memory_space<smem>>
    %c1_i32_126 = arith.constant 1 : i32
    %282 = tpu.dynamic_rotate %280 by %c1_i32_126 dim 1 : vector<15x128xf32>, i32 -> vector<15x128xf32>
    %283 = vector.broadcast %281 : f32 to vector<15x128xf32>
    %284 = arith.mulf %282, %283 : vector<15x128xf32>
    %285 = arith.addf %264, %284 : vector<15x128xf32>
    %c49 = arith.constant 49 : index
    %286 = memref.load %arg2[%c49] : memref<64xf32, #tpu.memory_space<smem>>
    %287 = vector.broadcast %286 : f32 to vector<15x128xf32>
    %288 = arith.mulf %280, %287 : vector<15x128xf32>
    %289 = arith.addf %268, %288 : vector<15x128xf32>
    %c50 = arith.constant 50 : index
    %290 = memref.load %arg2[%c50] : memref<64xf32, #tpu.memory_space<smem>>
    %c127_i32_127 = arith.constant 127 : i32
    %291 = tpu.dynamic_rotate %280 by %c127_i32_127 dim 1 : vector<15x128xf32>, i32 -> vector<15x128xf32>
    %292 = vector.broadcast %290 : f32 to vector<15x128xf32>
    %293 = arith.mulf %291, %292 : vector<15x128xf32>
    %294 = arith.addf %273, %293 : vector<15x128xf32>
    %c51 = arith.constant 51 : index
    %295 = memref.load %arg2[%c51] : memref<64xf32, #tpu.memory_space<smem>>
    %c126_i32_128 = arith.constant 126 : i32
    %296 = tpu.dynamic_rotate %280 by %c126_i32_128 dim 1 : vector<15x128xf32>, i32 -> vector<15x128xf32>
    %297 = vector.broadcast %295 : f32 to vector<15x128xf32>
    %298 = arith.mulf %296, %297 : vector<15x128xf32>
    %299 = arith.addf %278, %298 : vector<15x128xf32>
    %c0_129 = arith.constant 0 : index
    %c3_130 = arith.constant 3 : index
    %c1_131 = arith.constant 1 : index
    %c0_132 = arith.constant 0 : index
    %300 = vector.load %arg5[%c0_129, %c3_130, %c1_131, %c0_132] : memref<1x4x18x128xf32, #tpu.memory_space<vmem>>, vector<1x1x15x128xf32>
    %301 = vector.shape_cast %300 : vector<1x1x15x128xf32> to vector<15x128xf32>
    %c52 = arith.constant 52 : index
    %302 = memref.load %arg2[%c52] : memref<64xf32, #tpu.memory_space<smem>>
    %c1_i32_133 = arith.constant 1 : i32
    %303 = tpu.dynamic_rotate %301 by %c1_i32_133 dim 1 : vector<15x128xf32>, i32 -> vector<15x128xf32>
    %304 = vector.broadcast %302 : f32 to vector<15x128xf32>
    %305 = arith.mulf %303, %304 : vector<15x128xf32>
    %306 = arith.addf %285, %305 : vector<15x128xf32>
    %c53 = arith.constant 53 : index
    %307 = memref.load %arg2[%c53] : memref<64xf32, #tpu.memory_space<smem>>
    %308 = vector.broadcast %307 : f32 to vector<15x128xf32>
    %309 = arith.mulf %301, %308 : vector<15x128xf32>
    %310 = arith.addf %289, %309 : vector<15x128xf32>
    %c54 = arith.constant 54 : index
    %311 = memref.load %arg2[%c54] : memref<64xf32, #tpu.memory_space<smem>>
    %c127_i32_134 = arith.constant 127 : i32
    %312 = tpu.dynamic_rotate %301 by %c127_i32_134 dim 1 : vector<15x128xf32>, i32 -> vector<15x128xf32>
    %313 = vector.broadcast %311 : f32 to vector<15x128xf32>
    %314 = arith.mulf %312, %313 : vector<15x128xf32>
    %315 = arith.addf %294, %314 : vector<15x128xf32>
    %c55 = arith.constant 55 : index
    %316 = memref.load %arg2[%c55] : memref<64xf32, #tpu.memory_space<smem>>
    %c126_i32_135 = arith.constant 126 : i32
    %317 = tpu.dynamic_rotate %301 by %c126_i32_135 dim 1 : vector<15x128xf32>, i32 -> vector<15x128xf32>
    %318 = vector.broadcast %316 : f32 to vector<15x128xf32>
    %319 = arith.mulf %317, %318 : vector<15x128xf32>
    %320 = arith.addf %299, %319 : vector<15x128xf32>
    %c0_136 = arith.constant 0 : index
    %c3_137 = arith.constant 3 : index
    %c2_138 = arith.constant 2 : index
    %c0_139 = arith.constant 0 : index
    %321 = vector.load %arg5[%c0_136, %c3_137, %c2_138, %c0_139] : memref<1x4x18x128xf32, #tpu.memory_space<vmem>>, vector<1x1x15x128xf32>
    %322 = vector.shape_cast %321 : vector<1x1x15x128xf32> to vector<15x128xf32>
    %c56 = arith.constant 56 : index
    %323 = memref.load %arg2[%c56] : memref<64xf32, #tpu.memory_space<smem>>
    %c1_i32_140 = arith.constant 1 : i32
    %324 = tpu.dynamic_rotate %322 by %c1_i32_140 dim 1 : vector<15x128xf32>, i32 -> vector<15x128xf32>
    %325 = vector.broadcast %323 : f32 to vector<15x128xf32>
    %326 = arith.mulf %324, %325 : vector<15x128xf32>
    %327 = arith.addf %306, %326 : vector<15x128xf32>
    %c57 = arith.constant 57 : index
    %328 = memref.load %arg2[%c57] : memref<64xf32, #tpu.memory_space<smem>>
    %329 = vector.broadcast %328 : f32 to vector<15x128xf32>
    %330 = arith.mulf %322, %329 : vector<15x128xf32>
    %331 = arith.addf %310, %330 : vector<15x128xf32>
    %c58 = arith.constant 58 : index
    %332 = memref.load %arg2[%c58] : memref<64xf32, #tpu.memory_space<smem>>
    %c127_i32_141 = arith.constant 127 : i32
    %333 = tpu.dynamic_rotate %322 by %c127_i32_141 dim 1 : vector<15x128xf32>, i32 -> vector<15x128xf32>
    %334 = vector.broadcast %332 : f32 to vector<15x128xf32>
    %335 = arith.mulf %333, %334 : vector<15x128xf32>
    %336 = arith.addf %315, %335 : vector<15x128xf32>
    %c59 = arith.constant 59 : index
    %337 = memref.load %arg2[%c59] : memref<64xf32, #tpu.memory_space<smem>>
    %c126_i32_142 = arith.constant 126 : i32
    %338 = tpu.dynamic_rotate %322 by %c126_i32_142 dim 1 : vector<15x128xf32>, i32 -> vector<15x128xf32>
    %339 = vector.broadcast %337 : f32 to vector<15x128xf32>
    %340 = arith.mulf %338, %339 : vector<15x128xf32>
    %341 = arith.addf %320, %340 : vector<15x128xf32>
    %c0_143 = arith.constant 0 : index
    %c3_144 = arith.constant 3 : index
    %c3_145 = arith.constant 3 : index
    %c0_146 = arith.constant 0 : index
    %342 = vector.load %arg5[%c0_143, %c3_144, %c3_145, %c0_146] : memref<1x4x18x128xf32, #tpu.memory_space<vmem>>, vector<1x1x15x128xf32>
    %343 = vector.shape_cast %342 : vector<1x1x15x128xf32> to vector<15x128xf32>
    %c60 = arith.constant 60 : index
    %344 = memref.load %arg2[%c60] : memref<64xf32, #tpu.memory_space<smem>>
    %c1_i32_147 = arith.constant 1 : i32
    %345 = tpu.dynamic_rotate %343 by %c1_i32_147 dim 1 : vector<15x128xf32>, i32 -> vector<15x128xf32>
    %346 = vector.broadcast %344 : f32 to vector<15x128xf32>
    %347 = arith.mulf %345, %346 : vector<15x128xf32>
    %348 = arith.addf %327, %347 : vector<15x128xf32>
    %c61 = arith.constant 61 : index
    %349 = memref.load %arg2[%c61] : memref<64xf32, #tpu.memory_space<smem>>
    %350 = vector.broadcast %349 : f32 to vector<15x128xf32>
    %351 = arith.mulf %343, %350 : vector<15x128xf32>
    %352 = arith.addf %331, %351 : vector<15x128xf32>
    %c62 = arith.constant 62 : index
    %353 = memref.load %arg2[%c62] : memref<64xf32, #tpu.memory_space<smem>>
    %c127_i32_148 = arith.constant 127 : i32
    %354 = tpu.dynamic_rotate %343 by %c127_i32_148 dim 1 : vector<15x128xf32>, i32 -> vector<15x128xf32>
    %355 = vector.broadcast %353 : f32 to vector<15x128xf32>
    %356 = arith.mulf %354, %355 : vector<15x128xf32>
    %357 = arith.addf %336, %356 : vector<15x128xf32>
    %c63 = arith.constant 63 : index
    %358 = memref.load %arg2[%c63] : memref<64xf32, #tpu.memory_space<smem>>
    %c126_i32_149 = arith.constant 126 : i32
    %359 = tpu.dynamic_rotate %343 by %c126_i32_149 dim 1 : vector<15x128xf32>, i32 -> vector<15x128xf32>
    %360 = vector.broadcast %358 : f32 to vector<15x128xf32>
    %361 = arith.mulf %359, %360 : vector<15x128xf32>
    %362 = arith.addf %341, %361 : vector<15x128xf32>
    %363 = arith.addf %348, %352 : vector<15x128xf32>
    %364 = arith.addf %357, %362 : vector<15x128xf32>
    %365 = arith.addf %363, %364 : vector<15x128xf32>
    %366 = vector.broadcast %22 : f32 to vector<15x128xf32>
    %367 = arith.addf %365, %366 : vector<15x128xf32>
    %368 = arith.negf %367 : vector<15x128xf32>
    %369 = math.exp %368 : vector<15x128xf32>
    %cst_150 = arith.constant 1.000000e+00 : f32
    %370 = vector.broadcast %cst_150 : f32 to vector<15x128xf32>
    %371 = arith.addf %370, %369 : vector<15x128xf32>
    %372 = arith.divf %370, %371 : vector<15x128xf32>
    %c0_151 = arith.constant 0 : index
    %c0_152 = arith.constant 0 : index
    %c0_153 = arith.constant 0 : index
    %c0_154 = arith.constant 0 : index
    %373 = vector.load %arg4[%c0_151, %c0_152, %c0_153, %c0_154] : memref<1x1x15x128xf32, #tpu.memory_space<vmem>>, vector<1x1x15x128xf32>
    %374 = vector.shape_cast %373 : vector<1x1x15x128xf32> to vector<15x128xf32>
    %375 = vector.shape_cast %372 : vector<15x128xf32> to vector<1x1x15x128xf32>
    tpu.vector_store %arg4[%c0_151, %c0_152, %c0_153, %c0_154], %375 {strides = array<i32>} : memref<1x1x15x128xf32, #tpu.memory_space<vmem>>, vector<1x1x15x128xf32>,
    return
  }
  func.func @transform_0(%arg0: i32) -> (i32, i32, i32, i32) {
    %c0_i32 = arith.constant 0 : i32
    %c0_i32_0 = arith.constant 0 : i32
    %c0_i32_1 = arith.constant 0 : i32
    %c0_i32_2 = arith.constant 0 : i32
    return %arg0, %c0_i32, %c0_i32_0, %c0_i32_1 : i32, i32, i32, i32
  }
  func.func @transform_1(%arg0: i32) -> i32 {
    %c0_i32 = arith.constant 0 : i32
    %c0_i32_0 = arith.constant 0 : i32
    return %c0_i32 : i32
  }
  func.func @transform_2(%arg0: i32) -> i32 {
    %c0_i32 = arith.constant 0 : i32
    %c0_i32_0 = arith.constant 0 : i32
    return %c0_i32 : i32
  }
  func.func @transform_3(%arg0: i32) -> (i32, i32, i32, i32) {
    %c0_i32 = arith.constant 0 : i32
    %c0_i32_0 = arith.constant 0 : i32
    %c0_i32_1 = arith.constant 0 : i32
    %c0_i32_2 = arith.constant 0 : i32
    return %arg0, %c0_i32, %c0_i32_0, %c0_i32_1 : i32, i32, i32, i32
  }
}

</mosaic_0001>

<bundles_post_ra>
// kernel: tpu_custom_call.1
= control target key start
LH: loop header
LB: loop body
LE: loop exit
PB: predicated region body
PF: predicated region fallthrough
CT: control target
= control target key end

     0   :  { %s1812_s0 = inlined_call_operand.hbm [shape: f32[2,4,16,16], index: 0, kind: input, shape index: {}]   ;;  %s1813_s1 = inlined_call_operand.vmem [shape: f32[64], index: 1, kind: input, shape index: {}]   ;;  %s1814_s2 = inlined_call_operand.<no memory space> [shape: f32[1], index: 2, kind: input, shape index: {}]   ;;  %s1815_s3 = inlined_call_operand.vmem [shape: f32[2,1,15,128], index: 3, kind: output, shape index: {}]  }
   0x1   :  { %8 = sst [smem:[#allocation3]] %s1814_s2 }
   0x2   :  { %9 = vsyncpa [#allocation5], 0 }
   0x3   :  { %11 = vsyncpa [#allocation5 + $0x1], 0 }
   0x4   :  { %12 = vsyncpa [#allocation6], 0  ;;  %s1246_s14 = smov 0   ;;  %s1248_s15 = smov 0  }
   0x5   :  { %s1250_s16 = smov 0   ;;  %s1252_s17 = smov 0  }
   0x6 LB: > { %s1262_s2 = sadd.s32 4294967295, %s1214_s17   ;;  %s1264_s18 = sadd.s32 1, %s1214_s17   ;;  %s1214_s17 = sphi %s1252_s17, %s1822_s17   ;;  %s1210_s16 = sphi %s1250_s16, %s1821_s16   ;;  %s1206_s15 = sphi %s1248_s15, %s1820_s15   ;;  %s1202_s14 = sphi %s1246_s14, %s1819_s14  }
   0x7   : > { %s22_s19 = ssub.s32 %s1214_s17, %s1264_s18  ;;  %s25_s20 = sadd.s32 1, %s1210_s16 }
   0x8   : > { %p23_p0 = scmp.eq.s32.totalorder %s22_s19, 0  ;;  %p32_p1 = scmp.ne.s32.totalorder %s1210_s16, %s1206_s15 }
   0x9   : > { %p33_p2 = scmp.eq.s32.totalorder %s1214_s17, 0  ;;  %p38_p3 = scmp.ne.s32.totalorder %s1206_s15, %s1202_s14 }
   0xa   : > { %s1272_s21 = scalar_select %p23_p0, %s1210_s16, %s25_s20  }
   0xb   : > { %p34_p4 = por %p33_p2, %p32_p1  ;;  %p39_p5 = scmp.eq.s32.totalorder %s1262_s2, 0 }
   0xc   : > { %p981_p6 = scmp.ge.s32.totalorder %s1214_s17, 1  ;;  %p117_p7 = scmp.lt.s32.totalorder %s1214_s17, 3 }
   0xd   : > { %p1277_p8 = por %p39_p5, %p38_p3  ;;  %s129_s26 = sshll.u32 %s1813_s1, 4  ;;  %s130_s26 = int_to_ptr.vmem [resolvable:$true] %s129_s26 }
   0xe   : > { %p1281_p9 = pnand %p981_p6, %p117_p7  ;;  %p1082_p11 = scmp.lt.s32.totalorder %s1214_s17, 2 }
   0xf   : > { %s143_s27 = sand.u32 1, %s1210_s16   ;;  %s1216_s30 = smov [#allocation7]  }
  0x10   : > { %p1073_p10 = pneg %p1281_p9  ;;  %p1293_p13 = pnand %p1082_p11, %p34_p4 }
  0x11   : > { %s984_s29 = sshll.u32 %s143_s27, 6  ;;  %s1065_s4 = sshll.u32 %s1214_s17, 6 }
  0x12   : > { %p1074_p12 = pnand %p1073_p10, %p39_p5  ;;  %s152_s7 = scalar_lea.hbm %s1812_s0, %s1065_s4 }
  0x13   : > { %s147_s8 = scalar_lea.vmem [#allocation4], %s984_s29  ;;  %s153_s10 = sshll.u32 %s152_s7, 4  ;;  %s154_s10 = int_to_ptr.hbm [resolvable:$true] %s153_s10 }
  0x14   : > { %1076 = dma.vmem_to_smem (!%p1074_p12), %s130_s26, 16, %s1216_s30, [#allocation6]  }
  0x15   : > { %s155_s9 = sshll.u32 %s147_s8, 4  ;;  %s144_s11 = scalar_lea.sflag [#allocation5], %s143_s27  ;;  %s156_s9 = int_to_ptr.vmem [resolvable:$true] %s155_s9 }
  0x16   : > { %s1146_s12 = sshra.s32 %s154_s10, 4  ;;  %p1150_p1 = pneg %p1293_p13  ;;  %s1147_s12 = int_to_ptr.hbm [resolvable:$true] %s1146_s12 }
  0x17   : > { %s1148_s13 = scalar_lea.hbm %s1147_s12, 64  ;;  %s1153_s19 = scalar_lea.hbm %s1812_s0, 128 }
  0x18   : > { %p1149_p0 = scmp.ne.s32.totalorder %s1147_s12, %s1148_s13  ;;  %p1154_p4 = scmp.lt.s32.totalorder %s1147_s12, %s1812_s0 }
  0x19   : > { %p1155_p6 = scmp.lt.s32.totalorder %s1153_s19, %s1148_s13 }
  0x1a   : > { %p1151_p2 = pnand %p1150_p1, %p1149_p0 }
  0x1b   : > { %p1156_p7 = por %p1155_p6, %p1154_p4 }
  0x1c   : > { %p1152_p3 = pneg %p1151_p2 }
  0x1e   : > { %p1157_p10 = pnand %p1156_p7, %p1152_p3 }
  0x20   : > { %1160 = shalt.err (!%p1157_p10)
}
  0x21   : > { %s1217_s25 = smov 128   ;;  %s1218_s26 = smov 8  }
  0x22   : > { %1080 = dma.hbm_to_vmem [thread:$0]  (!%p1293_p13), %s154_s10, 1024, %s156_s9, %s144_s11, %s1217_s25, %s1217_s25, %s1218_s26  }
  0x23   : > { %167 = sbr.rel (%p1281_p9) target bundleno = 462 (0x1ce), region = 32  ;;  %s169_s27 = sand.u32 (!%p1281_p9), 1, %s1206_s15  }
  0x24   : > { %s988_s29 = sshll.u32 (!%p1281_p9), %s169_s27, 6  ;;  %s170_s30 = scalar_lea.sflag (!%p1281_p9), [#allocation5], %s169_s27 }
  0x25   : > { %s1313_s4 = scalar_lea.vmem (!%p1281_p9), [#allocation4], %s988_s29 }
  0x28   : > { %1193 = dma.done.wait (%p1277_p8), %s170_s30, 1024  }
  0x29   : > { %1195 = vsyncadd (%p1277_p8), %s170_s30, 4294966272 }
  0x2a   : > { %1197 = dma.done.wait (%p39_p5), [#allocation6], 16  }
  0x2b   : > { %1199 = vsyncadd (%p39_p5), [#allocation6], 4294967280 }
  0x2c   : > { %184 = sfence }
  0x2d   : > { %v220_v0 = vld [vmem:[%s1313_s4] sm:$0xff]  ;;  %vm222_vm0 = vcmask 130048   ;;  %s1324_s23 = sld [smem:[#allocation7 + $0x1]]  ;;  %v1219_v1 = vmov 0.0   ;;  %s1220_s22 = smov 126   ;;  %v221_v7 = vld [vmem:[%s1313_s4 + $0x8] sm:$0xff] }
  0x2e   : > { %208 = vst [vmem:[#allocation2] sm:$0xff] %v1219_v1  ;;  %s1326_s28 = sld [smem:[#allocation7 + $0x5]]  ;;  %s1221_s5 = smov 127   ;;  %v992_v29 = vld [vmem:[%s1313_s4 + $0x10] sm:$0xff]  ;;  %v993_v30 = vld [vmem:[%s1313_s4 + $0x18] sm:$0xff]  ;;  %v994_v60 = vld [vmem:[%s1313_s4 + $0x20] sm:$0xff] }
  0x2f   : > { %209 = vst [vmem:[#allocation2 + $0x8] sm:$0xff] %v1219_v1  ;;  %s1006_s6 = sld [smem:[#allocation7 + $0x9]]  ;;  %s1222_s7 = smov 1   ;;  %v995_v61 = vld [vmem:[%s1313_s4 + $0x28] sm:$0xff] }
  0x30   : > { %223 = vst.msk [vmem:[#allocation2 + $0x1] sm:$0xff] %vm222_vm0, %v220_v0  ;;  %s1010_s8 = sld [smem:[#allocation7 + $0xd]]  ;;  %p203_p5 = scmp.lt.s32.totalorder %s1262_s2, 1 }
  0x31   : > { %210 = vst [vmem:[#allocation2 + $0x10] sm:$0x3] %v1219_v1  ;;  %s1014_s9 = sld [smem:[#allocation7 + $0x11]] }
  0x32   : > { %211 = vst [vmem:[#allocation2 + $0x18] sm:$0xff] %v1219_v1  ;;  %s1018_s10 = sld [smem:[#allocation7 + $0x15]]  ;;  %s1824_s2 = smov (!%p203_p5, %s1262_s2), 1 }
  0x33   : > { %212 = vst [vmem:[#allocation2 + $0x20] sm:$0xff] %v1219_v1  ;;  %v257_v2 = vstv %s1324_s23  ;;  %s1022_s11 = sld [smem:[#allocation7 + $0x19]] }
  0x34   : > { %213 = vst [vmem:[#allocation2 + $0x28] sm:$0x3] %v1219_v1  ;;  %v295_v3 = vstv %s1326_s28  ;;  %s1026_s12 = sld [smem:[#allocation7 + $0x1d]] }
  0x35   : > { %214 = vst [vmem:[#allocation2 + $0x30] sm:$0xff] %v1219_v1  ;;  %v333_v10 = vstv %s1006_s6  ;;  %s1030_s13 = sld [smem:[#allocation7 + $0x21]] }
  0x36   : > { %215 = vst [vmem:[#allocation2 + $0x38] sm:$0xff] %v1219_v1  ;;  %v371_v19 = vstv %s1010_s8  ;;  %s1394_s14 = sld [smem:[#allocation7 + $0x6]] }
  0x37   : > { %v244_v4 = vld [vmem:[#allocation2] sm:$0xff]  ;;  %216 = vst [vmem:[#allocation2 + $0x40] sm:$0x3] %v1219_v1  ;;  %v409_v31 = vstv %s1014_s9  ;;  %s1396_s17 = sld [smem:[#allocation7 + $0x2]] }
  0x38   : > { %v282_v5 = vld [vmem:[#allocation2 + $0x1] sm:$0xff]  ;;  %273 = vrot.lane.b32.xlu2 %v244_v4, %s1220_s22  ;;  %v258_v6 = vmul.f32 %v257_v2, %v244_v4  ;;  %217 = vst [vmem:[#allocation2 + $0x48] sm:$0xff] %v1219_v1  ;;  %263 = vrot.lane.b32.xlu1 %v244_v4, %s1221_s5  ;;  %v447_v38 = vstv %s1018_s10  ;;  %s1034_s19 = sld [smem:[#allocation7 + $0x25]] }
  0x39   : > { %v296_v8 = vmul.f32 %v295_v3, %v282_v5  ;;  %218 = vst [vmem:[#allocation2 + $0x50] sm:$0xff] %v1219_v1  ;;  %247 = vrot.lane.b32.xlu0 %v244_v4, %s1222_s7  ;;  %v485_v45 = vstv %s1022_s11  ;;  %s1398_s20 = sld [smem:[#allocation7 + $0x3]] }
  0x3a   : > { %219 = vst [vmem:[#allocation2 + $0x58] sm:$0x3] %v1219_v1  ;;  %v523_v53 = vstv %s1026_s12  ;;  %s1402_s24 = sld [smem:[#allocation7 + $0x7]] }
  0x3b   : > { %v298_v9 = vadd.f32 %v296_v8, %v258_v6  ;;  %224 = vst.msk [vmem:[#allocation2 + $0x9] sm:$0xff] %vm222_vm0, %v221_v7  ;;  %v561_v62 = vstv %s1030_s13  ;;  %s1420_s25 = sld [smem:[#allocation7 + $0xa]] }
  0x3c   : > { %229 = vst.msk [vmem:[#allocation2 + $0x19] sm:$0xff] %vm222_vm0, %v992_v29  ;;  %v305_v7 = vstv %s1394_s14  ;;  %s1038_s26 = sld [smem:[#allocation7 + $0x29]] }
  0x3d   : > { %230 = vst.msk [vmem:[#allocation2 + $0x21] sm:$0xff] %vm222_vm0, %v993_v30  ;;  %v267_v8 = vstv %s1396_s17  ;;  %s1431_s27 = sld [smem:[#allocation7 + $0xb]] }
  0x3e   : > { %235 = vst.msk [vmem:[#allocation2 + $0x31] sm:$0xff] %vm222_vm0, %v994_v60  ;;  %s1001_s29 = sld [smem:[#allocation7 + $0x4]] }
  0x3f   : > { %236 = vst.msk [vmem:[#allocation2 + $0x39] sm:$0xff] %vm222_vm0, %v995_v61  ;;  %s246_s30 = sld [smem:[#allocation7]] }
  0x40   : > { %s1450_s23 = sld [smem:[#allocation7 + $0xe]] }
  0x41   : > { %s1042_s28 = sld [smem:[#allocation7 + $0x2d]] }
  0x42   : > { %v245_v11 = vld [vmem:[#allocation2 + $0x8] sm:$0x7f]  ;;  %s1459_s6 = sld [smem:[#allocation7 + $0xf]] }
  0x43   : > { %v283_v12 = vld [vmem:[#allocation2 + $0x9] sm:$0x7f]  ;;  %v259_v14 = vmul.f32 %v257_v2, %v245_v11  ;;  %275 = vrot.lane.b32.xlu2 %v245_v11, %s1220_s22  ;;  %265 = vrot.lane.b32.xlu1 %v245_v11, %s1221_s5  ;;  %v396_v32 = vld [vmem:[#allocation2 + $0x18] sm:$0xff]  ;;  %s1466_s8 = sld [smem:[#allocation7 + $0x8]] }
  0x44   : > { %v320_v13 = vld [vmem:[#allocation2 + $0x2] sm:$0xff]  ;;  %v297_v15 = vmul.f32 %v295_v3, %v283_v12  ;;  %v321_v17 = vld [vmem:[#allocation2 + $0xa] sm:$0x7f]  ;;  %249 = vrot.lane.b32.xlu0 %v245_v11, %s1222_s7  ;;  %v410_v33 = vmul.f32 %v409_v31, %v396_v32  ;;  %v434_v39 = vld [vmem:[#allocation2 + $0x19] sm:$0xff]  ;;  %v599_v11 = vstv %s1034_s19  ;;  %s1483_s9 = sld [smem:[#allocation7 + $0x12]] }
  0x45   : > { %v334_v16 = vmul.f32 %v333_v10, %v320_v13  ;;  %v335_v18 = vmul.f32 %v333_v10, %v321_v17  ;;  %v358_v22 = vld [vmem:[#allocation2 + $0x3] sm:$0xff]  ;;  %v359_v26 = vld [vmem:[#allocation2 + $0xb] sm:$0x7f]  ;;  %v448_v40 = vmul.f32 %v447_v38, %v434_v39  ;;  %v472_v46 = vld [vmem:[#allocation2 + $0x1a] sm:$0xff]  ;;  %s1499_s10 = sld [smem:[#allocation7 + $0x31]] }
  0x46   : > { %v299_v20 = vadd.f32 %v297_v15, %v259_v14  ;;  %v372_v24 = vmul.f32 %v371_v19, %v358_v22  ;;  %v373_v27 = vmul.f32 %v371_v19, %v359_v26  ;;  %v397_v34 = vld [vmem:[#allocation2 + $0x20] sm:$0x7f]  ;;  %v486_v47 = vmul.f32 %v485_v45, %v472_v46  ;;  %v1387_v63 = vld [vmem:[#allocation2 + $0x30] sm:$0xff]  ;;  %v1391_v1 = vld [vmem:[#allocation2 + $0x38] sm:$0x7f]  ;;  %s1502_s11 = sld [smem:[#allocation7 + $0x13]] }
  0x47   : > { %v336_v21 = vadd.f32 %v334_v16, %v298_v9  ;;  %v411_v35 = vmul.f32 %v409_v31, %v397_v34  ;;  %v435_v42 = vld [vmem:[#allocation2 + $0x21] sm:$0x7f]  ;;  %v562_v0 = vmul.f32 %v561_v62, %v1387_v63  ;;  %v563_v3 = vmul.f32 %v561_v62, %v1391_v1  ;;  %v1409_v10 = vld [vmem:[#allocation2 + $0x31] sm:$0xff]  ;;  %s1508_s12 = sld [smem:[#allocation7 + $0xc]] }
  0x48   : > { %v337_v23 = vadd.f32 %v335_v18, %v299_v20  ;;  %v449_v43 = vmul.f32 %v447_v38, %v435_v42  ;;  %v473_v49 = vld [vmem:[#allocation2 + $0x22] sm:$0x7f]  ;;  %v277_v14 = vstv %s1398_s20  ;;  %v315_v15 = vstv %s1402_s24  ;;  %v1452_v38 = vld [vmem:[#allocation2 + $0x3a] sm:$0x7f]  ;;  %s1050_s13 = sld [smem:[#allocation7 + $0x35]] }
  0x49   : > { %v374_v25 = vadd.f32 %v372_v24, %v336_v21  ;;  %v487_v50 = vmul.f32 %v485_v45, %v473_v49  ;;  %v1367_v52 = vld [vmem:[#allocation2 + $0x1b] sm:$0xff]  ;;  %v1372_v56 = vld [vmem:[#allocation2 + $0x23] sm:$0x7f]  ;;  %s1541_s14 = sld [smem:[#allocation7 + $0x17]] }
  0x4a   : > { %v375_v28 = vadd.f32 %v373_v27, %v337_v23  ;;  %v524_v54 = vmul.f32 %v523_v53, %v1367_v52  ;;  %v525_v57 = vmul.f32 %v523_v53, %v1372_v56  ;;  %v343_v27 = vstv %s1420_s25  ;;  %s1013_s17 = sld [smem:[#allocation7 + $0x10]] }
  0x4b   : > { %301 = vrot.lane.b32.xlu2 %v282_v5, %s1221_s5  ;;  %287 = vrot.lane.b32.xlu1 %v283_v12, %s1222_s7  ;;  %v412_v36 = vadd.f32 %v410_v33, %v374_v25  ;;  %v1442_v33 = vld [vmem:[#allocation2 + $0x32] sm:$0xff]  ;;  %s1564_s19 = sld [smem:[#allocation7 + $0x1a]] }
  0x4c   : > { %285 = vrot.lane.b32.xlu0 %v282_v5, %s1222_s7  ;;  %v413_v37 = vadd.f32 %v411_v35, %v375_v28  ;;  %s1575_s20 = sld [smem:[#allocation7 + $0x1b]] }
  0x4d   : > { %v450_v41 = vadd.f32 %v448_v40, %v412_v36  ;;  %v353_v36 = vstv %s1431_s27  ;;  %s1017_s24 = sld [smem:[#allocation7 + $0x14]] }
  0x4e   : > { %v451_v44 = vadd.f32 %v449_v43, %v413_v37  ;;  %v289_v37 = vstv %s1001_s29  ;;  %s1595_s25 = sld [smem:[#allocation7 + $0x1e]] }
  0x4f   : > { %v488_v48 = vadd.f32 %v486_v47, %v450_v41  ;;  %s1021_s27 = sld [smem:[#allocation7 + $0x18]] }
  0x50   : > { %v489_v51 = vadd.f32 %v487_v50, %v451_v44  ;;  %s1617_s29 = sld [smem:[#allocation7 + $0x22]] }
  0x51   : > { %v526_v55 = vadd.f32 %v524_v54, %v488_v48  ;;  %v381_v54 = vstv %s1450_s23  ;;  %s1025_s23 = sld [smem:[#allocation7 + $0x1c]] }
  0x52   : > { %v527_v58 = vadd.f32 %v525_v57, %v489_v51 }
  0x53   : > { %313 = vrot.lane.b32.xlu2 %v283_v12, %s1220_s22  ;;  %311 = vrot.lane.b32.xlu1 %v282_v5, %s1220_s22  ;;  %v564_v4 = vadd.f32 %v562_v0, %v526_v55 }
  0x54   : > { %303 = vrot.lane.b32.xlu0 %v283_v12, %s1221_s5  ;;  %v565_v5 = vadd.f32 %v563_v3, %v527_v58  ;;  %v1481_v3 = vld [vmem:[#allocation2 + $0x33] sm:$0xff] }
  0x5b   : > { %339 = vrot.lane.b32.xlu2 %v320_v13, %s1221_s5  ;;  %325 = vrot.lane.b32.xlu1 %v321_v17, %s1222_s7 }
  0x5c   : > { %323 = vrot.lane.b32.xlu0 %v320_v13, %s1222_s7 }
  0x63   : > { %351 = vrot.lane.b32.xlu2 %v321_v17, %s1220_s22  ;;  %349 = vrot.lane.b32.xlu1 %v320_v13, %s1220_s22  ;;  %v600_v13 = vmul.f32 %v599_v11, %v1409_v10 }
  0x64   : > { %341 = vrot.lane.b32.xlu0 %v321_v17, %s1221_s5  ;;  %v1422_v17 = vld [vmem:[#allocation2 + $0x39] sm:$0x7f] }
  0x65   : > { %v602_v20 = vadd.f32 %v600_v13, %v564_v4  ;;  %v601_v21 = vmul.f32 %v599_v11, %v1422_v17  ;;  %v675_v4 = vstv %s1042_s28  ;;  %s1643_s28 = sld [smem:[#allocation7 + $0x26]] }
  0x67   : > { %v603_v25 = vadd.f32 %v601_v21, %v565_v5  ;;  %v391_v5 = vstv %s1459_s6  ;;  %s1647_s6 = sld [smem:[#allocation7 + $0x27]] }
  0x6b   : > { %377 = vrot.lane.b32.xlu2 %v358_v22, %s1221_s5  ;;  %363 = vrot.lane.b32.xlu1 %v359_v26, %s1222_s7 }
  0x6c   : > { %361 = vrot.lane.b32.xlu0 %v358_v22, %s1222_s7 }
  0x73   : > { %389 = vrot.lane.b32.xlu2 %v359_v26, %s1220_s22  ;;  %387 = vrot.lane.b32.xlu1 %v358_v22, %s1220_s22 }
  0x74   : > { %379 = vrot.lane.b32.xlu0 %v359_v26, %s1221_s5 }
  0x7b   : > { %415 = vrot.lane.b32.xlu2 %v396_v32, %s1221_s5  ;;  %401 = vrot.lane.b32.xlu1 %v397_v34, %s1222_s7 }
  0x7c   : > { %399 = vrot.lane.b32.xlu0 %v396_v32, %s1222_s7 }
  0x83   : > { %427 = vrot.lane.b32.xlu2 %v397_v34, %s1220_s22  ;;  %425 = vrot.lane.b32.xlu1 %v396_v32, %s1220_s22 }
  0x84   : > { %417 = vrot.lane.b32.xlu0 %v397_v34, %s1221_s5  ;;  %v637_v34 = vstv %s1038_s26  ;;  %s1599_s26 = sld [smem:[#allocation7 + $0x1f]] }
  0x85   : > { %v638_v35 = vmul.f32 %v637_v34, %v1442_v33  ;;  %v639_v41 = vmul.f32 %v637_v34, %v1452_v38 }
  0x87   : > { %v640_v40 = vadd.f32 %v638_v35, %v602_v20  ;;  %v641_v48 = vadd.f32 %v639_v41, %v603_v25  ;;  %v713_v35 = vstv %s1499_s10  ;;  %s1671_s10 = sld [smem:[#allocation7 + $0x2b]] }
  0x8b   : > { %453 = vrot.lane.b32.xlu2 %v434_v39, %s1221_s5  ;;  %439 = vrot.lane.b32.xlu1 %v435_v42, %s1222_s7 }
  0x8c   : > { %437 = vrot.lane.b32.xlu0 %v434_v39, %s1222_s7 }
  0x92   : > { %v1378_v59 = vpop.permute.xlu2 %273 }
  0x93   : > { %465 = vrot.lane.b32.xlu2 %v435_v42, %s1220_s22  ;;  %463 = vrot.lane.b32.xlu1 %v434_v39, %s1220_s22  ;;  %v251_v39 = vstv %s246_s30  ;;  %v278_v57 = vmul.f32 %v277_v14, %v1378_v59  ;;  %v676_v59 = vmul.f32 %v675_v4, %v1481_v3  ;;  %s1621_s30 = sld [smem:[#allocation7 + $0x23]] }
  0x94   : > { %455 = vrot.lane.b32.xlu0 %v435_v42, %s1221_s5 }
  0x9b   : > { %491 = vrot.lane.b32.xlu2 %v472_v46, %s1221_s5  ;;  %477 = vrot.lane.b32.xlu1 %v473_v49, %s1222_s7 }
  0x9c   : > { %475 = vrot.lane.b32.xlu0 %v472_v46, %s1222_s7 }
  0x9d   : > { %v276_v2 = vpop.permute.xlu2 %275 }
  0x9e   : > { %v279_v18 = vmul.f32 %v277_v14, %v276_v2 }
  0xa3   : > { %503 = vrot.lane.b32.xlu2 %v473_v49, %s1220_s22  ;;  %501 = vrot.lane.b32.xlu1 %v472_v46, %s1220_s22 }
  0xa4   : > { %493 = vrot.lane.b32.xlu0 %v473_v49, %s1221_s5 }
  0xa5   : > { %v302_v6 = vpop.permute.xlu2 %301 }
  0xa6   : > { %v306_v9 = vmul.f32 %v305_v7, %v302_v6  ;;  %v327_v6 = vstv %s1466_s8  ;;  %s1029_s8 = sld [smem:[#allocation7 + $0x20]] }
  0xaa   : > { %v264_v12 = vpop.permute.xlu1 %263 }
  0xab   : > { %529 = vrot.lane.b32.xlu2 %v1367_v52, %s1221_s5  ;;  %515 = vrot.lane.b32.xlu1 %v1372_v56, %s1222_s7  ;;  %v268_v16 = vmul.f32 %v267_v8, %v264_v12  ;;  %v248_v19 = vpop.permute.xlu0 %247 }
  0xac   : > { %513 = vrot.lane.b32.xlu0 %v1367_v52, %s1222_s7  ;;  %v252_v49 = vmul.f32 %v251_v39, %v248_v19 }
  0xad   : > { %v314_v22 = vpop.permute.xlu2 %313  ;;  %v308_v23 = vadd.f32 %v306_v9, %v268_v16 }
  0xae   : > { %v317_v24 = vmul.f32 %v315_v15, %v314_v22  ;;  %v419_v22 = vstv %s1483_s9  ;;  %s1667_s9 = sld [smem:[#allocation7 + $0x2a]] }
  0xb0   : > { %v319_v26 = vadd.f32 %v317_v24, %v279_v18  ;;  %v997_v24 = vld [vmem:[%s1313_s4 + $0x38] sm:$0xff] }
  0xb1   : > { %242 = vst.msk [vmem:[#allocation2 + $0x51] sm:$0xff] %vm222_vm0, %v997_v24 }
  0xb3   : > { %541 = vrot.lane.b32.xlu2 %v1372_v56, %s1220_s22  ;;  %539 = vrot.lane.b32.xlu1 %v1367_v52, %s1220_s22 }
  0xb4   : > { %531 = vrot.lane.b32.xlu0 %v1372_v56, %s1221_s5 }
  0xb5   : > { %v340_v28 = vpop.permute.xlu2 %339  ;;  %v266_v29 = vpop.permute.xlu1 %265 }
  0xb6   : > { %v344_v30 = vmul.f32 %v343_v27, %v340_v28  ;;  %v250_v31 = vpop.permute.xlu0 %249  ;;  %v269_v62 = vmul.f32 %v267_v8, %v266_v29  ;;  %v678_v8 = vadd.f32 %v676_v59, %v640_v40 }
  0xb7   : > { %v253_v44 = vmul.f32 %v251_v39, %v250_v31 }
  0xb8   : > { %v346_v32 = vadd.f32 %v344_v30, %v308_v23  ;;  %v996_v23 = vld [vmem:[%s1313_s4 + $0x30] sm:$0xff]  ;;  %s1529_s4 = sld [smem:[#allocation7 + $0x16]] }
  0xb9   : > { %241 = vst.msk [vmem:[#allocation2 + $0x49] sm:$0xff] %vm222_vm0, %v996_v23 }
  0xbb   : > { %567 = vrot.lane.b32.xlu2 %v1387_v63, %s1221_s5  ;;  %553 = vrot.lane.b32.xlu1 %v1391_v1, %s1222_s7 }
  0xbc   : > { %551 = vrot.lane.b32.xlu0 %v1387_v63, %s1222_s7 }
  0xbd   : > { %v352_v42 = vpop.permute.xlu2 %351  ;;  %v288_v43 = vpop.permute.xlu1 %287 }
  0xbe   : > { %v355_v45 = vmul.f32 %v353_v36, %v352_v42  ;;  %v291_v46 = vmul.f32 %v289_v37, %v288_v43  ;;  %v286_v47 = vpop.permute.xlu0 %285 }
  0xbf   : > { %v290_v50 = vmul.f32 %v289_v37, %v286_v47  ;;  %v365_v37 = vstv %s1508_s12  ;;  %s1058_s12 = sld [smem:[#allocation7 + $0x3d]] }
  0xc0   : > { %v357_v51 = vadd.f32 %v355_v45, %v319_v26  ;;  %v293_v52 = vadd.f32 %v291_v46, %v253_v44  ;;  %v1531_v39 = vld [vmem:[#allocation2 + $0x48] sm:$0xff] }
  0xc1   : > { %v292_v53 = vadd.f32 %v290_v50, %v252_v49 }
  0xc3   : > { %579 = vrot.lane.b32.xlu2 %v1391_v1, %s1220_s22  ;;  %577 = vrot.lane.b32.xlu1 %v1387_v63, %s1220_s22 }
  0xc4   : > { %569 = vrot.lane.b32.xlu0 %v1391_v1, %s1221_s5 }
  0xc5   : > { %v378_v55 = vpop.permute.xlu2 %377  ;;  %v312_v56 = vpop.permute.xlu1 %311 }
  0xc6   : > { %v382_v58 = vmul.f32 %v381_v54, %v378_v55  ;;  %v316_v60 = vmul.f32 %v315_v15, %v312_v56  ;;  %v304_v61 = vpop.permute.xlu0 %303 }
  0xc7   : > { %v307_v63 = vmul.f32 %v305_v7, %v304_v61  ;;  %v1492_v7 = vld [vmem:[#allocation2 + $0x3b] sm:$0x7f] }
  0xc8   : > { %v384_v0 = vadd.f32 %v382_v58, %v346_v32  ;;  %v318_v2 = vadd.f32 %v316_v60, %v278_v57  ;;  %v677_v9 = vmul.f32 %v675_v4, %v1492_v7  ;;  %v1566_v4 = vld [vmem:[#allocation2 + $0x51] sm:$0x7f] }
  0xc9   : > { %v309_v1 = vadd.f32 %v307_v63, %v269_v62 }
  0xca   : > { %v679_v16 = vadd.f32 %v677_v9, %v641_v48 }
  0xcb   : > { %605 = vrot.lane.b32.xlu2 %v1409_v10, %s1221_s5  ;;  %591 = vrot.lane.b32.xlu1 %v1422_v17, %s1222_s7 }
  0xcc   : > { %589 = vrot.lane.b32.xlu0 %v1409_v10, %s1222_s7 }
  0xcd   : > { %v390_v11 = vpop.permute.xlu2 %389  ;;  %v326_v12 = vpop.permute.xlu1 %325 }
  0xce   : > { %v393_v13 = vmul.f32 %v391_v5, %v390_v11  ;;  %v329_v14 = vmul.f32 %v327_v6, %v326_v12  ;;  %v324_v15 = vpop.permute.xlu0 %323 }
  0xcf   : > { %v328_v18 = vmul.f32 %v327_v6, %v324_v15 }
  0xd0   : > { %v395_v19 = vadd.f32 %v393_v13, %v357_v51  ;;  %v331_v20 = vadd.f32 %v329_v14, %v293_v52  ;;  %v457_v52 = vstv %s1529_s4  ;;  %s1732_s4 = sld [smem:[#allocation7 + $0x2e]] }
  0xd1   : > { %v330_v21 = vadd.f32 %v328_v18, %v292_v53  ;;  %v495_v18 = vstv %s1564_s19  ;;  %s1738_s19 = sld [smem:[#allocation7 + $0x34]] }
  0xd3   : > { %617 = vrot.lane.b32.xlu2 %v1422_v17, %s1220_s22  ;;  %615 = vrot.lane.b32.xlu1 %v1409_v10, %s1220_s22 }
  0xd4   : > { %607 = vrot.lane.b32.xlu0 %v1422_v17, %s1221_s5  ;;  %v429_v17 = vstv %s1502_s11  ;;  %s1054_s11 = sld [smem:[#allocation7 + $0x39]] }
  0xd5   : > { %v416_v25 = vpop.permute.xlu2 %415  ;;  %v350_v26 = vpop.permute.xlu1 %349 }
  0xd6   : > { %v420_v28 = vmul.f32 %v419_v22, %v416_v25  ;;  %v354_v10 = vmul.f32 %v353_v36, %v350_v26  ;;  %v342_v29 = vpop.permute.xlu0 %341  ;;  %v1536_v36 = vld [vmem:[#allocation2 + $0x50] sm:$0x7f] }
  0xd7   : > { %v345_v30 = vmul.f32 %v343_v27, %v342_v29  ;;  %v714_v27 = vmul.f32 %v713_v35, %v1531_v39  ;;  %v715_v42 = vmul.f32 %v713_v35, %v1536_v36 }
  0xd8   : > { %v422_v31 = vadd.f32 %v420_v28, %v384_v0  ;;  %v356_v32 = vadd.f32 %v354_v10, %v318_v2  ;;  %v1556_v0 = vld [vmem:[#allocation2 + $0x49] sm:$0xff] }
  0xd9   : > { %v347_v34 = vadd.f32 %v345_v30, %v309_v1  ;;  %v716_v46 = vadd.f32 %v714_v27, %v678_v8  ;;  %v717_v48 = vadd.f32 %v715_v42, %v679_v16  ;;  %v403_v1 = vstv %s1013_s17  ;;  %s1736_s17 = sld [smem:[#allocation7 + $0x32]] }
  0xda   : > { %v533_v27 = vstv %s1595_s25  ;;  %s1746_s25 = sld [smem:[#allocation7 + $0x36]] }
  0xdb   : > { %643 = vrot.lane.b32.xlu2 %v1442_v33, %s1221_s5  ;;  %629 = vrot.lane.b32.xlu1 %v1452_v38, %s1222_s7 }
  0xdc   : > { %627 = vrot.lane.b32.xlu0 %v1442_v33, %s1222_s7 }
  0xdd   : > { %v428_v40 = vpop.permute.xlu2 %427  ;;  %v364_v41 = vpop.permute.xlu1 %363 }
  0xde   : > { %v431_v43 = vmul.f32 %v429_v17, %v428_v40  ;;  %v367_v44 = vmul.f32 %v365_v37, %v364_v41  ;;  %v362_v45 = vpop.permute.xlu0 %361 }
  0xdf   : > { %v366_v47 = vmul.f32 %v365_v37, %v362_v45 }
  0xe0   : > { %v433_v49 = vadd.f32 %v431_v43, %v395_v19  ;;  %v369_v50 = vadd.f32 %v367_v44, %v331_v20 }
  0xe1   : > { %v368_v51 = vadd.f32 %v366_v47, %v330_v21 }
  0xe3   : > { %655 = vrot.lane.b32.xlu2 %v1452_v38, %s1220_s22  ;;  %653 = vrot.lane.b32.xlu1 %v1442_v33, %s1220_s22  ;;  %v751_v33 = vstv %s1050_s13  ;;  %s1734_s13 = sld [smem:[#allocation7 + $0x2f]] }
  0xe4   : > { %645 = vrot.lane.b32.xlu0 %v1452_v38, %s1221_s5  ;;  %v752_v2 = vmul.f32 %v751_v33, %v1556_v0  ;;  %v467_v38 = vstv %s1541_s14  ;;  %v753_v59 = vmul.f32 %v751_v33, %v1566_v4  ;;  %s1045_s14 = sld [smem:[#allocation7 + $0x30]] }
  0xe5   : > { %v454_v53 = vpop.permute.xlu2 %453  ;;  %v388_v55 = vpop.permute.xlu1 %387 }
  0xe6   : > { %v458_v56 = vmul.f32 %v457_v52, %v454_v53  ;;  %v392_v57 = vmul.f32 %v391_v5, %v388_v55  ;;  %v380_v58 = vpop.permute.xlu0 %379  ;;  %v1573_v12 = vadd.f32 %v753_v59, %v717_v48 }
  0xe7   : > { %v383_v60 = vmul.f32 %v381_v54, %v380_v58  ;;  %v1570_v54 = vadd.f32 %v752_v2, %v716_v46 }
  0xe8   : > { %v460_v61 = vadd.f32 %v458_v56, %v422_v31  ;;  %v394_v62 = vadd.f32 %v392_v57, %v356_v32 }
  0xe9   : > { %v385_v63 = vadd.f32 %v383_v60, %v347_v34  ;;  %v571_v60 = vstv %s1617_s29  ;;  %s1754_s29 = sld [smem:[#allocation7 + $0x3a]] }
  0xeb   : > { %681 = vrot.lane.b32.xlu2 %v1481_v3, %s1221_s5  ;;  %667 = vrot.lane.b32.xlu1 %v1492_v7, %s1222_s7 }
  0xec   : > { %665 = vrot.lane.b32.xlu0 %v1481_v3, %s1222_s7 }
  0xed   : > { %v466_v5 = vpop.permute.xlu2 %465  ;;  %v402_v6 = vpop.permute.xlu1 %401 }
  0xee   : > { %v469_v8 = vmul.f32 %v467_v38, %v466_v5  ;;  %v405_v9 = vmul.f32 %v403_v1, %v402_v6  ;;  %v400_v11 = vpop.permute.xlu0 %399  ;;  %v1634_v5 = vld [vmem:[#allocation2 + $0x4a] sm:$0xff]  ;;  %v1636_v6 = vld [vmem:[#allocation2 + $0x52] sm:$0x7f] }
  0xef   : > { %v404_v13 = vmul.f32 %v403_v1, %v400_v11 }
  0xf0   : > { %v471_v14 = vadd.f32 %v469_v8, %v433_v49  ;;  %v407_v15 = vadd.f32 %v405_v9, %v369_v50  ;;  %v479_v49 = vstv %s1021_s27  ;;  %v517_v8 = vstv %s1025_s23  ;;  %s1751_s27 = sld [smem:[#allocation7 + $0x3c]] }
  0xf1   : > { %v406_v16 = vadd.f32 %v404_v13, %v368_v51  ;;  %s1762_s23 = sld [smem:[#allocation7 + $0x3e]] }
  0xf3   : > { %693 = vrot.lane.b32.xlu2 %v1492_v7, %s1220_s22  ;;  %691 = vrot.lane.b32.xlu1 %v1481_v3, %s1220_s22  ;;  %v505_v3 = vstv %s1575_s20  ;;  %s1740_s20 = sld [smem:[#allocation7 + $0x33]] }
  0xf4   : > { %683 = vrot.lane.b32.xlu0 %v1492_v7, %s1221_s5  ;;  %v441_v7 = vstv %s1017_s24  ;;  %s1744_s24 = sld [smem:[#allocation7 + $0x38]] }
  0xf5   : > { %v492_v19 = vpop.permute.xlu2 %491  ;;  %v426_v20 = vpop.permute.xlu1 %425 }
  0xf6   : > { %v496_v21 = vmul.f32 %v495_v18, %v492_v19  ;;  %v430_v23 = vmul.f32 %v429_v17, %v426_v20  ;;  %v418_v24 = vpop.permute.xlu0 %417 }
  0xf7   : > { %v421_v25 = vmul.f32 %v419_v22, %v418_v24 }
  0xf8   : > { %v498_v26 = vadd.f32 %v496_v21, %v460_v61  ;;  %v432_v28 = vadd.f32 %v430_v23, %v394_v62  ;;  %v609_v21 = vstv %s1643_s28  ;;  %s1769_s28 = sld [smem:[#allocation7 + $0x3f]] }
  0xf9   : > { %v423_v10 = vadd.f32 %v421_v25, %v385_v63 }
  0xfb   : > { %719 = vrot.lane.b32.xlu2 %v1531_v39, %s1221_s5  ;;  %705 = vrot.lane.b32.xlu1 %v1536_v36, %s1222_s7 }
  0xfc   : > { %703 = vrot.lane.b32.xlu0 %v1531_v39, %s1222_s7 }
  0xfd   : > { %v504_v29 = vpop.permute.xlu2 %503  ;;  %v440_v30 = vpop.permute.xlu1 %439 }
  0xfe   : > { %v507_v22 = vmul.f32 %v505_v3, %v504_v29  ;;  %v443_v31 = vmul.f32 %v441_v7, %v440_v30  ;;  %v438_v32 = vpop.permute.xlu0 %437  ;;  %v1658_v29 = vld [vmem:[#allocation2 + $0x4b] sm:$0xff]  ;;  %v1660_v30 = vld [vmem:[#allocation2 + $0x53] sm:$0x7f] }
  0xff   : > { %v442_v34 = vmul.f32 %v441_v7, %v438_v32  ;;  %v555_v32 = vstv %s1029_s8  ;;  %s1066_s8 = sshll.u32 %s1824_s2, 4 }
 0x100   : > { %v509_v35 = vadd.f32 %v507_v22, %v471_v14  ;;  %v445_v17 = vadd.f32 %v443_v31, %v407_v15  ;;  %v619_v31 = vstv %s1647_s6  ;;  %s243_s6 = sld [smem:[#allocation3]] }
 0x101   : > { %v444_v37 = vadd.f32 %v442_v34, %v406_v16 }
 0x103   : > { %731 = vrot.lane.b32.xlu2 %v1536_v36, %s1220_s22  ;;  %729 = vrot.lane.b32.xlu1 %v1531_v39, %s1220_s22  ;;  %v543_v39 = vstv %s1599_s26  ;;  %s1748_s26 = sld [smem:[#allocation7 + $0x37]] }
 0x104   : > { %721 = vrot.lane.b32.xlu0 %v1536_v36, %s1221_s5 }
 0x105   : > { %v530_v40 = vpop.permute.xlu2 %529  ;;  %v464_v41 = vpop.permute.xlu1 %463 }
 0x106   : > { %v534_v42 = vmul.f32 %v533_v27, %v530_v40  ;;  %v468_v43 = vmul.f32 %v467_v38, %v464_v41  ;;  %v456_v44 = vpop.permute.xlu0 %455 }
 0x107   : > { %v459_v45 = vmul.f32 %v457_v52, %v456_v44  ;;  %v647_v44 = vstv %s1667_s9 }
 0x108   : > { %v536_v46 = vadd.f32 %v534_v42, %v498_v26  ;;  %v470_v47 = vadd.f32 %v468_v43, %v432_v28 }
 0x109   : > { %v461_v48 = vadd.f32 %v459_v45, %v423_v10 }
 0x10b   : > { %757 = vrot.lane.b32.xlu2 %v1556_v0, %s1221_s5  ;;  %743 = vrot.lane.b32.xlu1 %v1566_v4, %s1222_s7 }
 0x10c   : > { %741 = vrot.lane.b32.xlu0 %v1556_v0, %s1222_s7 }
 0x10d   : > { %v542_v36 = vpop.permute.xlu2 %541  ;;  %v478_v50 = vpop.permute.xlu1 %477 }
 0x10e   : > { %v545_v51 = vmul.f32 %v543_v39, %v542_v36  ;;  %v481_v52 = vmul.f32 %v479_v49, %v478_v50  ;;  %v476_v53 = vpop.permute.xlu0 %475 }
 0x10f   : > { %v480_v55 = vmul.f32 %v479_v49, %v476_v53 }
 0x110   : > { %v547_v56 = vadd.f32 %v545_v51, %v509_v35  ;;  %v483_v57 = vadd.f32 %v481_v52, %v445_v17  ;;  %v657_v52 = vstv %s1671_s10 }
 0x111   : > { %v482_v58 = vadd.f32 %v480_v55, %v444_v37 }
 0x113   : > { %769 = vrot.lane.b32.xlu2 %v1566_v4, %s1220_s22  ;;  %767 = vrot.lane.b32.xlu1 %v1556_v0, %s1220_s22 }
 0x114   : > { %759 = vrot.lane.b32.xlu0 %v1566_v4, %s1221_s5  ;;  %v581_v4 = vstv %s1621_s30  ;;  %s1756_s30 = sld [smem:[#allocation7 + $0x3b]] }
 0x115   : > { %v568_v61 = vpop.permute.xlu2 %567  ;;  %v502_v62 = vpop.permute.xlu1 %501 }
 0x116   : > { %v572_v63 = vmul.f32 %v571_v60, %v568_v61  ;;  %v506_v33 = vmul.f32 %v505_v3, %v502_v62  ;;  %v494_v2 = vpop.permute.xlu0 %493 }
 0x117   : > { %v497_v38 = vmul.f32 %v495_v18, %v494_v2 }
 0x118   : > { %v574_v1 = vadd.f32 %v572_v63, %v536_v46  ;;  %v508_v59 = vadd.f32 %v506_v33, %v470_v47 }
 0x119   : > { %v499_v0 = vadd.f32 %v497_v38, %v461_v48 }
 0x11b   : > { %795 = vrot.lane.b32.xlu2 %v1634_v5, %s1221_s5  ;;  %781 = vrot.lane.b32.xlu1 %v1636_v6, %s1222_s7 }
 0x11c   : > { %779 = vrot.lane.b32.xlu0 %v1634_v5, %s1222_s7 }
 0x11d   : > { %v580_v9 = vpop.permute.xlu2 %579  ;;  %v516_v11 = vpop.permute.xlu1 %515 }
 0x11e   : > { %v583_v13 = vmul.f32 %v581_v4, %v580_v9  ;;  %v519_v14 = vmul.f32 %v517_v8, %v516_v11  ;;  %v514_v15 = vpop.permute.xlu0 %513 }
 0x11f   : > { %v518_v16 = vmul.f32 %v517_v8, %v514_v15 }
 0x120   : > { %v585_v18 = vadd.f32 %v583_v13, %v547_v56  ;;  %v521_v19 = vadd.f32 %v519_v14, %v483_v57 }
 0x121   : > { %v520_v20 = vadd.f32 %v518_v16, %v482_v58 }
 0x123   : > { %807 = vrot.lane.b32.xlu2 %v1636_v6, %s1220_s22  ;;  %805 = vrot.lane.b32.xlu1 %v1634_v5, %s1220_s22 }
 0x124   : > { %797 = vrot.lane.b32.xlu0 %v1636_v6, %s1221_s5 }
 0x125   : > { %v606_v23 = vpop.permute.xlu2 %605  ;;  %v540_v24 = vpop.permute.xlu1 %539 }
 0x126   : > { %v610_v25 = vmul.f32 %v609_v21, %v606_v23  ;;  %v544_v26 = vmul.f32 %v543_v39, %v540_v24  ;;  %v532_v28 = vpop.permute.xlu0 %531 }
 0x127   : > { %v535_v10 = vmul.f32 %v533_v27, %v532_v28 }
 0x128   : > { %v612_v3 = vadd.f32 %v610_v25, %v574_v1  ;;  %v546_v7 = vadd.f32 %v544_v26, %v508_v59 }
 0x129   : > { %v537_v22 = vadd.f32 %v535_v10, %v499_v0 }
 0x12b   : > { %833 = vrot.lane.b32.xlu2 %v1658_v29, %s1221_s5  ;;  %819 = vrot.lane.b32.xlu1 %v1660_v30, %s1222_s7 }
 0x12c   : > { %817 = vrot.lane.b32.xlu0 %v1658_v29, %s1222_s7  ;;  %s1033_s7 = sld [smem:[#allocation7 + $0x24]] }
 0x12d   : > { %v618_v34 = vpop.permute.xlu2 %617  ;;  %v554_v35 = vpop.permute.xlu1 %553 }
 0x12e   : > { %v621_v17 = vmul.f32 %v619_v31, %v618_v34  ;;  %v557_v37 = vmul.f32 %v555_v32, %v554_v35  ;;  %v552_v27 = vpop.permute.xlu0 %551 }
 0x12f   : > { %v556_v40 = vmul.f32 %v555_v32, %v552_v27 }
 0x130   : > { %v623_v41 = vadd.f32 %v621_v17, %v585_v18  ;;  %v559_v42 = vadd.f32 %v557_v37, %v521_v19 }
 0x131   : > { %v558_v43 = vadd.f32 %v556_v40, %v520_v20  ;;  %v789_v40 = vstv %s1054_s11 }
 0x132   : > { %v593_v53 = vstv %s1033_s7  ;;  %s207_s7 = scalar_lea.vmem %s1815_s3, %s1066_s8 }
 0x133   : > { %845 = vrot.lane.b32.xlu2 %v1660_v30, %s1220_s22  ;;  %843 = vrot.lane.b32.xlu1 %v1658_v29, %s1220_s22  ;;  %s1037_s22 = sld [smem:[#allocation7 + $0x28]] }
 0x134   : > { %835 = vrot.lane.b32.xlu0 %v1660_v30, %s1221_s5  ;;  %s1693_s5 = sld [smem:[#allocation7 + $0x2c]] }
 0x135   : > { %v644_v45 = vpop.permute.xlu2 %643  ;;  %v578_v46 = vpop.permute.xlu1 %577 }
 0x136   : > { %v648_v47 = vmul.f32 %v647_v44, %v644_v45  ;;  %v582_v48 = vmul.f32 %v581_v4, %v578_v46  ;;  %v570_v39 = vpop.permute.xlu0 %569 }
 0x137   : > { %v573_v49 = vmul.f32 %v571_v60, %v570_v39 }
 0x138   : > { %v1682_v36 = vadd.f32 %v648_v47, %v612_v3  ;;  %v584_v50 = vadd.f32 %v582_v48, %v546_v7  ;;  %v790_v48 = vmul.f32 %v789_v40, %v1634_v5 }
 0x139   : > { %v575_v51 = vadd.f32 %v573_v49, %v537_v22  ;;  %v631_v9 = vstv %s1037_s22 }
 0x13a   : > { %v669_v28 = vstv %s1693_s5 }
 0x13d   : > { %v656_v55 = vpop.permute.xlu2 %655  ;;  %v592_v56 = vpop.permute.xlu1 %591 }
 0x13e   : > { %v659_v57 = vmul.f32 %v657_v52, %v656_v55  ;;  %v595_v58 = vmul.f32 %v593_v53, %v592_v56  ;;  %v590_v61 = vpop.permute.xlu0 %589  ;;  %v707_v56 = vstv %s1045_s14 }
 0x13f   : > { %v594_v62 = vmul.f32 %v593_v53, %v590_v61  ;;  %v745_v61 = vstv %s1738_s19 }
 0x140   : > { %v1685_v63 = vadd.f32 %v659_v57, %v623_v41  ;;  %v597_v33 = vadd.f32 %v595_v58, %v559_v42  ;;  %v827_v41 = vstv %s1058_s12  ;;  %v791_v42 = vmul.f32 %v789_v40, %v1636_v6 }
 0x141   : > { %v596_v2 = vadd.f32 %v594_v62, %v558_v43  ;;  %v829_v45 = vmul.f32 %v827_v41, %v1660_v30  ;;  %v828_v49 = vmul.f32 %v827_v41, %v1658_v29  ;;  %v792_v6 = vadd.f32 %v790_v48, %v1570_v54 }
 0x142   : > { %v793_v46 = vadd.f32 %v791_v42, %v1573_v12  ;;  %v685_v29 = vstv %s1732_s4  ;;  %v695_v57 = vstv %s1734_s13  ;;  %v809_v40 = vstv %s1756_s30 }
 0x143   : > { %v837_v42 = vstv %s1762_s23 }
 0x144   : > { %v1720_v39 = vadd.f32 %v829_v45, %v793_v46 }
 0x145   : > { %v616_v38 = vpop.permute.xlu1 %615  ;;  %v1687_v0 = vpop.permute.xlu2 %681 }
 0x146   : > { %v620_v1 = vmul.f32 %v619_v31, %v616_v38  ;;  %v608_v60 = vpop.permute.xlu0 %607  ;;  %v733_v38 = vstv %s1740_s20 }
 0x147   : > { %v611_v59 = vmul.f32 %v609_v21, %v608_v60 }
 0x148   : > { %v622_v4 = vadd.f32 %v620_v1, %v584_v50 }
 0x149   : > { %v613_v8 = vadd.f32 %v611_v59, %v575_v51 }
 0x14d   : > { %v630_v11 = vpop.permute.xlu1 %629  ;;  %v1691_v19 = vpop.permute.xlu2 %693 }
 0x14e   : > { %v633_v13 = vmul.f32 %v631_v9, %v630_v11  ;;  %v628_v14 = vpop.permute.xlu0 %627  ;;  %v697_v59 = vmul.f32 %v695_v57, %v1691_v19 }
 0x14f   : > { %v632_v15 = vmul.f32 %v631_v9, %v628_v14  ;;  %v761_v9 = vstv %s1746_s25 }
 0x150   : > { %v635_v16 = vadd.f32 %v633_v13, %v597_v33  ;;  %v686_v33 = vmul.f32 %v685_v29, %v1687_v0 }
 0x151   : > { %v1689_v18 = vadd.f32 %v632_v15, %v596_v2  ;;  %v723_v2 = vstv %s1736_s17 }
 0x155   : > { %v654_v20 = vpop.permute.xlu1 %653  ;;  %v1700_v10 = vpop.permute.xlu2 %719 }
 0x156   : > { %v658_v23 = vmul.f32 %v657_v52, %v654_v20  ;;  %v646_v21 = vpop.permute.xlu0 %645  ;;  %v1724_v52 = vadd.f32 %v828_v49, %v792_v6  ;;  %v724_v14 = vmul.f32 %v723_v2, %v1700_v10  ;;  %v688_v20 = vadd.f32 %v686_v33, %v1682_v36 }
 0x157   : > { %v649_v24 = vmul.f32 %v647_v44, %v646_v21 }
 0x158   : > { %v1695_v25 = vadd.f32 %v658_v23, %v622_v4  ;;  %v771_v23 = vstv %s1748_s26 }
 0x159   : > { %v1697_v26 = vadd.f32 %v649_v24, %v613_v8  ;;  %v783_v8 = vstv %s1744_s24  ;;  %v699_v24 = vadd.f32 %v697_v59, %v1685_v63 }
 0x15d   : > { %v668_v3 = vpop.permute.xlu1 %667  ;;  %v732_v34 = vpop.permute.xlu2 %731 }
 0x15e   : > { %v671_v7 = vmul.f32 %v669_v28, %v668_v3  ;;  %v666_v22 = vpop.permute.xlu0 %665  ;;  %v735_v15 = vmul.f32 %v733_v38, %v732_v34 }
 0x15f   : > { %v670_v58 = vmul.f32 %v669_v28, %v666_v22  ;;  %v799_v22 = vstv %s1754_s29 }
 0x160   : > { %v1702_v31 = vadd.f32 %v671_v7, %v635_v16  ;;  %v821_v7 = vstv %s1751_s27 }
 0x161   : > { %v672_v0 = vadd.f32 %v670_v58, %v1689_v18 }
 0x165   : > { %v1704_v32 = vpop.permute.xlu1 %691  ;;  %v1708_v27 = vpop.permute.xlu2 %757 }
 0x166   : > { %v1706_v35 = vpop.permute.xlu0 %683  ;;  %v696_v10 = vmul.f32 %v695_v57, %v1704_v32  ;;  %v762_v48 = vmul.f32 %v761_v9, %v1708_v27 }
 0x167   : > { %v687_v18 = vmul.f32 %v685_v29, %v1706_v35  ;;  %v847_v29 = vstv %s1769_s28 }
 0x16d   : > { %v706_v17 = vpop.permute.xlu1 %705  ;;  %v1717_v47 = vpop.permute.xlu2 %769 }
 0x16e   : > { %v704_v37 = vpop.permute.xlu0 %703  ;;  %v709_v1 = vmul.f32 %v707_v56, %v706_v17  ;;  %v726_v17 = vadd.f32 %v724_v14, %v688_v20 }
 0x16f   : > { %v708_v4 = vmul.f32 %v707_v56, %v704_v37  ;;  %v737_v37 = vadd.f32 %v735_v15, %v699_v24 }
 0x170   : > { %v711_v19 = vadd.f32 %v709_v1, %v1702_v31 }
 0x171   : > { %v710_v28 = vadd.f32 %v708_v4, %v672_v0 }
 0x175   : > { %v1711_v43 = vpop.permute.xlu1 %729  ;;  %v1726_v53 = vpop.permute.xlu2 %795 }
 0x176   : > { %v1713_v44 = vpop.permute.xlu0 %721  ;;  %v734_v31 = vmul.f32 %v733_v38, %v1711_v43  ;;  %v800_v57 = vmul.f32 %v799_v22, %v1726_v53 }
 0x177   : > { %v725_v32 = vmul.f32 %v723_v2, %v1713_v44  ;;  %v764_v2 = vadd.f32 %v762_v48, %v726_v17 }
 0x179   : > { %v802_v53 = vadd.f32 %v800_v57, %v764_v2 }
 0x17d   : > { %v744_v50 = vpop.permute.xlu1 %743  ;;  %v1742_v12 = vpop.permute.xlu2 %807 }
 0x17e   : > { %v742_v51 = vpop.permute.xlu0 %741  ;;  %v747_v11 = vmul.f32 %v745_v61, %v744_v50  ;;  %v698_v50 = vadd.f32 %v696_v10, %v1695_v25  ;;  %v811_v25 = vmul.f32 %v809_v40, %v1742_v12 }
 0x17f   : > { %v746_v16 = vmul.f32 %v745_v61, %v742_v51  ;;  %v689_v51 = vadd.f32 %v687_v18, %v1697_v26 }
 0x180   : > { %v749_v34 = vadd.f32 %v747_v11, %v711_v19  ;;  %v736_v27 = vadd.f32 %v734_v31, %v698_v50 }
 0x181   : > { %v748_v36 = vadd.f32 %v746_v16, %v710_v28  ;;  %v727_v33 = vadd.f32 %v725_v32, %v689_v51  ;;  %v858_v16 = vstv %s243_s6 }
 0x185   : > { %v1728_v55 = vpop.permute.xlu1 %767  ;;  %v834_v13 = vpop.permute.xlu2 %833 }
 0x186   : > { %v1730_v30 = vpop.permute.xlu0 %759  ;;  %v772_v6 = vmul.f32 %v771_v23, %v1728_v55 }
 0x187   : > { %v763_v43 = vmul.f32 %v761_v9, %v1730_v30 }
 0x188   : > { %v774_v38 = vadd.f32 %v772_v6, %v736_v27 }
 0x189   : > { %v765_v1 = vadd.f32 %v763_v43, %v727_v33 }
 0x18d   : > { %v782_v54 = vpop.permute.xlu1 %781  ;;  %v846_v58 = vpop.permute.xlu2 %845 }
 0x18e   : > { %v780_v5 = vpop.permute.xlu0 %779  ;;  %v785_v21 = vmul.f32 %v783_v8, %v782_v54  ;;  %v849_v59 = vmul.f32 %v847_v29, %v846_v58 }
 0x18f   : > { %v784_v3 = vmul.f32 %v783_v8, %v780_v5  ;;  %v773_v5 = vmul.f32 %v771_v23, %v1717_v47  ;;  %v838_v47 = vmul.f32 %v837_v42, %v834_v13 }
 0x190   : > { %v787_v45 = vadd.f32 %v785_v21, %v749_v34 }
 0x191   : > { %v786_v49 = vadd.f32 %v784_v3, %v748_v36  ;;  %v775_v30 = vadd.f32 %v773_v5, %v737_v37  ;;  %v840_v15 = vadd.f32 %v838_v47, %v802_v53 }
 0x193   : > { %v813_v11 = vadd.f32 %v811_v25, %v775_v30 }
 0x195   : > { %v806_v62 = vpop.permute.xlu1 %805 }
 0x196   : > { %v798_v60 = vpop.permute.xlu0 %797  ;;  %v810_v44 = vmul.f32 %v809_v40, %v806_v62 }
 0x197   : > { %v801_v26 = vmul.f32 %v799_v22, %v798_v60  ;;  %v851_v60 = vadd.f32 %v849_v59, %v813_v11 }
 0x198   : > { %v812_v8 = vadd.f32 %v810_v44, %v774_v38 }
 0x19d   : > { %v820_v41 = vpop.permute.xlu1 %819 }
 0x19e   : > { %v823_v63 = vmul.f32 %v821_v7, %v820_v41  ;;  %v818_v46 = vpop.permute.xlu0 %817 }
 0x19f   : > { %v822_v35 = vmul.f32 %v821_v7, %v818_v46 }
 0x1a0   : > { %v825_v54 = vadd.f32 %v823_v63, %v787_v45 }
 0x1a1   : > { %v824_v56 = vadd.f32 %v822_v35, %v786_v49 }
 0x1a2   : > { %v853_v61 = vadd.f32 %v1720_v39, %v825_v54  ;;  %v803_v39 = vadd.f32 %v801_v26, %v765_v1 }
 0x1a3   : > { %v852_v55 = vadd.f32 %v1724_v52, %v824_v56 }
 0x1a5   : > { %v844_v4 = vpop.permute.xlu1 %843 }
 0x1a6   : > { %v848_v9 = vmul.f32 %v847_v29, %v844_v4  ;;  %v836_v62 = vpop.permute.xlu0 %835 }
 0x1a7   : > { %v839_v14 = vmul.f32 %v837_v42, %v836_v62 }
 0x1a8   : > { %v850_v12 = vadd.f32 %v848_v9, %v812_v8 }
 0x1a9   : > { %v841_v0 = vadd.f32 %v839_v14, %v803_v39 }
 0x1aa   : > { %v854_v52 = vadd.f32 %v850_v12, %v840_v15 }
 0x1ab   : > { %v855_v13 = vadd.f32 %v851_v60, %v841_v0 }
 0x1ac   : > { %v856_v20 = vadd.f32 %v854_v52, %v852_v55 }
 0x1ad   : > { %v857_v23 = vadd.f32 %v855_v13, %v853_v61 }
 0x1ae   : > { %v859_v19 = vadd.f32 %v858_v16, %v856_v20 }
 0x1af   : > { %v860_v21 = vadd.f32 %v858_v16, %v857_v23 }
 0x1b0   : > { %v1061_v24 = vmul.f32 -1.442695, %v859_v19 }
 0x1b1   : > { %v1062_v28 = vmul.f32 -1.442695, %v860_v21 }
 0x1b2   : > { %1123 = vpow2.f32 %v1061_v24 }
 0x1b3   : > { %1125 = vpow2.f32 %v1062_v28 }
 0x1b8   : > { %v1124_v3 = vpop.eup %1123 }
 0x1b9   : > { %v1126_v7 = vpop.eup %1125  ;;  %v867_v10 = vadd.f32 1.0, %v1124_v3 }
 0x1ba   : > { %v868_v18 = vadd.f32 1.0, %v1126_v7 }
 0x1bb   : > { %1127 = vrcp.f32 %v867_v10  ;;  %v880_v36 = vand.u32 2147483648, %v867_v10  ;;  %v878_v42 = vand.u32 2147483647, %v867_v10  ;;  %vm874_vm3 = vweird.f32 %v867_v10 }
 0x1bc   : > { %1129 = vrcp.f32 %v868_v18  ;;  %v895_v45 = vand.u32 2147483648, %v868_v18  ;;  %v893_v46 = vand.u32 2147483647, %v868_v18  ;;  %vm889_vm5 = vweird.f32 %v868_v18 }
 0x1bd   : > { %v881_v32 = vor.u32 1.1754944e-38, %v880_v36  ;;  %vm879_vm6 = vcmp.eq.f32.partialorder %v878_v42, 8.507059e+37 }
 0x1be   : > { %v896_v50 = vor.u32 1.1754944e-38, %v895_v45  ;;  %vm894_vm8 = vcmp.eq.f32.partialorder %v893_v46, 8.507059e+37 }
 0x1c1   : > { %v1128_v22 = vpop.eup %1127 }
 0x1c2   : > { %v1130_v34 = vpop.eup %1129  ;;  %v870_v17 = vmul.f32 %v1128_v22, %v867_v10  ;;  %vm875_vm1 = vweird.f32 %v1128_v22 }
 0x1c3   : > { %v885_v37 = vmul.f32 %v1130_v34, %v868_v18  ;;  %vm890_vm2 = vweird.f32 %v1130_v34  ;;  %vm876_vm4 = vmor %vm874_vm3, %vm875_vm1 }
 0x1c4   : > { %v871_v40 = vsub.f32 1.0, %v870_v17  ;;  %vm891_vm7 = vmor %vm889_vm5, %vm890_vm2 }
 0x1c5   : > { %v886_v41 = vsub.f32 1.0, %v885_v37 }
 0x1c6   : > { %v872_v31 = vmul.f32 %v1128_v22, %v871_v40 }
 0x1c7   : > { %v887_v63 = vmul.f32 %v1130_v34, %v886_v41 }
 0x1c8   : > { %v873_v48 = vadd.f32 %v1128_v22, %v872_v31 }
 0x1c9   : > { %v888_v49 = vadd.f32 %v1130_v34, %v887_v63 }
 0x1ca   : > { %v877_v35 = vsel %vm876_vm4, %v1128_v22, %v873_v48 }
 0x1cb   : > { %v882_v51 = vsel %vm879_vm6, %v881_v32, %v877_v35  ;;  %v892_v6 = vsel %vm891_vm7, %v1130_v34, %v888_v49 }
 0x1cc   : > { %899 = vst [vmem:[%s207_s7] sm:$0xff] %v882_v51  ;;  %v897_v54 = vsel %vm894_vm8, %v896_v50, %v892_v6 }
 0x1cd   : > { %900 = vst [vmem:[%s207_s7 + $0x8] sm:$0x7f] %v897_v54 }
 0x1ce PF: > { %p15_p8 = scmp.ge.s32.totalorder %s1264_s18, 4   ;;  %s1819_s14 = smov %s1206_s15 }
 0x1cf   : > { %s1820_s15 = smov %s1210_s16  ;;  %s1821_s16 = smov %s1272_s21 }
 0x1d0   : > { %s1822_s17 = smov %s1264_s18  ;;  %17 = sbr.rel (!%p15_p8) target bundleno = 6 (0x6), region = 83 }
 0x1d5   :  { %922 = vsyncpa [#allocation5], 1 }
 0x1d6   :  { %924 = vsyncpa [#allocation5 + $0x1], 1 }
 0x1d7   :  { %925 = vsyncpa [#allocation6], 1 }
 0x1d8   :  { %927 = vsyncpa [#allocation6 + $0x1], 1 }

</bundles_post_ra>
